<compile_context>
chip_gen: v7x
topology: tpu7x:2x2x1
jax: 0.10.0
libtpu: 0.0.40
codegen_flags: <defaults>
</compile_context>

<pallas_src>
import functools
from math import ceil

import jax
import jax.numpy as jnp
from jax.experimental import pallas as pl
from jax.experimental.pallas import tpu as pltpu

base_model = [[1, 16, 1, 1, 3], [6, 24, 2, 2, 3], [6, 40, 2, 2, 5],
              [6, 80, 3, 2, 3], [6, 112, 3, 1, 5], [6, 192, 4, 2, 5],
              [6, 320, 1, 1, 3]]

phi_values = {'b0': (0, 224, 0.2), 'b1': (0.5, 240, 0.2), 'b2': (1, 260, 0.3),
              'b3': (2, 300, 0.3), 'b4': (3, 380, 0.4), 'b5': (4, 456, 0.4),
              'b6': (5, 528, 0.5), 'b7': (6, 600, 0.5)}

BN_EPS = 1e-5
VMEM_LIMIT = 32 * 1024 * 1024   # explicit scoped-VMEM cap, safe on v5e/v6e/v7x


def _round_up(x, m):
    return ((x + m - 1) // m) * m


def _pick_m_tile(M):
    Mp = _round_up(M, 8)
    for t in (512, 256, 128):
        if Mp % t == 0:
            return Mp, t
    if Mp <= 1024:
        return Mp, Mp
    Mp = _round_up(M, 512)
    return Mp, 512


def _pick_cn_tile(D):
    """D is a multiple of 128; cover the whole dim when small, else a big divisor."""
    if D <= 512:
        return D
    for t in (512, 384, 256, 128):
        if D % t == 0:
            return t
    return 128


# --------------------------------------------------------------------------
# Pallas kernels
# --------------------------------------------------------------------------
def _mm_kernel(*refs, act, has_gate, has_res):
    """Tiled matmul with K reduction and fused gate/affine/act/residual epilogue."""
    a_ref, b_ref, s_ref, c_ref = refs[:4]
    idx = 4
    g_ref = r_ref = None
    if has_gate:
        g_ref = refs[idx]
        idx += 1
    if has_res:
        r_ref = refs[idx]
        idx += 1
    o_ref, acc_ref = refs[idx], refs[idx + 1]

    kk = pl.program_id(3)

    @pl.when(kk == 0)
    def _():
        acc_ref[...] = jnp.zeros_like(acc_ref)

    a = a_ref[0]
    if has_gate:
        a = a * g_ref[0]                       # SE gate fused into the A tile
    acc_ref[...] += jnp.dot(a, b_ref[...], preferred_element_type=jnp.float32)

    @pl.when(kk == pl.num_programs(3) - 1)
    def _():
        y = acc_ref[...] * s_ref[...] + c_ref[...]
        if act == "silu":
            y = y * jax.nn.sigmoid(y)
        elif act == "sigmoid":
            y = jax.nn.sigmoid(y)
        if has_res:                            # only legal with act == "none"
            y = y + r_ref[0].astype(jnp.float32)
        o_ref[0] = y.astype(o_ref.dtype)


def _dw_kernel(x_ref, w_ref, s_ref, c_ref, o_ref, p_ref, *, k, stride, inv_hw):
    """Depthwise k x k conv on a VMEM-resident plane + fused BN + SiLU + avg-pool.

    x_ref: (stride^2, Hq, Wq, tc) phase-split padded input (bf16)
    w_ref: (k*k, tc) per-channel tap weights (f32)
    o_ref: (1, Ho, Wo, tc) bf16 output;  p_ref: (1, 1, tc) f32 spatial mean.
    """
    _, Ho, Wo, tc = o_ref.shape
    acc = jnp.zeros((Ho, Wo, tc), jnp.float32)
    for kh in range(k):
        for kw in range(k):
            ph = (kh % stride) * stride + (kw % stride)
            r0 = kh // stride
            c0 = kw // stride
            xt = x_ref[ph, r0:r0 + Ho, c0:c0 + Wo, :].astype(jnp.float32)
            acc = acc + xt * w_ref[kh * k + kw, :]
    y = acc * s_ref[0, :] + c_ref[0, :]
    y = y * jax.nn.sigmoid(y)                                   # SiLU
    o_ref[0] = y.astype(o_ref.dtype)
    p_ref[...] = (jnp.sum(y, axis=(0, 1)) * inv_hw).reshape(1, 1, tc)


def _pool_kernel(x_ref, o_ref, acc_ref, *, inv_hw):
    """Tiled global average pool: reduce HW chunks into a (B, tc) accumulator."""
    h = pl.program_id(1)

    @pl.when(h == 0)
    def _():
        acc_ref[...] = jnp.zeros_like(acc_ref)

    acc_ref[...] += jnp.sum(x_ref[...].astype(jnp.float32), axis=1)

    @pl.when(h == pl.num_programs(1) - 1)
    def _():
        o_ref[...] = acc_ref[...] * inv_hw


# --------------------------------------------------------------------------
# Cached pallas_call builders (avoid recompiling identical repeated blocks)
# --------------------------------------------------------------------------
@functools.lru_cache(maxsize=None)
def _matmul_call(G, Mp, Np, Kp, tm, tn, tk, act, has_gate, has_res, out_dtype_name):
    out_dtype = jnp.dtype(out_dtype_name)
    in_specs = [
        pl.BlockSpec((1, tm, tk), lambda g, m, n, k: (g, m, k)),
        pl.BlockSpec((tk, tn), lambda g, m, n, k: (k, n)),
        pl.BlockSpec((1, tn), lambda g, m, n, k: (0, n)),
        pl.BlockSpec((1, tn), lambda g, m, n, k: (0, n)),
    ]
    if has_gate:
        in_specs.append(pl.BlockSpec((1, 1, tk), lambda g, m, n, k: (g, 0, k)))
    if has_res:
        in_specs.append(pl.BlockSpec((1, tm, tn), lambda g, m, n, k: (g, m, n)))
    call = pl.pallas_call(
        functools.partial(_mm_kernel, act=act, has_gate=has_gate, has_res=has_res),
        out_shape=jax.ShapeDtypeStruct((G, Mp, Np), out_dtype),
        grid=(G, Mp // tm, Np // tn, Kp // tk),
        in_specs=in_specs,
        out_specs=pl.BlockSpec((1, tm, tn), lambda g, m, n, k: (g, m, n)),
        scratch_shapes=[pltpu.VMEM((tm, tn), jnp.float32)],
        compiler_params=pltpu.CompilerParams(
            dimension_semantics=("parallel", "parallel", "parallel", "arbitrary"),
            vmem_limit_bytes=VMEM_LIMIT),
    )
    return jax.jit(call)


@functools.lru_cache(maxsize=None)
def _dw_call(B, Cp, Hq, Wq, Ho, Wo, k, stride, tc):
    s2 = stride * stride
    call = pl.pallas_call(
        functools.partial(_dw_kernel, k=k, stride=stride, inv_hw=1.0 / (Ho * Wo)),
        out_shape=(jax.ShapeDtypeStruct((B, Ho, Wo, Cp), jnp.bfloat16),
                   jax.ShapeDtypeStruct((B, 1, Cp), jnp.float32)),
        grid=(B, Cp // tc),
        in_specs=[pl.BlockSpec((s2, Hq, Wq, tc), lambda b, c: (b, 0, 0, c)),
                  pl.BlockSpec((k * k, tc), lambda b, c: (0, c)),
                  pl.BlockSpec((1, tc), lambda b, c: (0, c)),
                  pl.BlockSpec((1, tc), lambda b, c: (0, c))],
        out_specs=(pl.BlockSpec((1, Ho, Wo, tc), lambda b, c: (b, 0, 0, c)),
                   pl.BlockSpec((1, 1, tc), lambda b, c: (b, 0, c))),
        compiler_params=pltpu.CompilerParams(
            dimension_semantics=("parallel", "parallel"),
            vmem_limit_bytes=VMEM_LIMIT),
    )
    return jax.jit(call)


# --------------------------------------------------------------------------
# Pallas-backed building blocks
# --------------------------------------------------------------------------
def fused_matmul(a, b, scale=None, shift=None, act="none", gate=None,
                 residual=None, out_dtype=jnp.bfloat16):
    """out[g] = act((a[g] * gate[g]) @ b * scale + shift) (+ residual[g]).

    a: (G, M, K).  b: (Kb, N) with Kb <= K (rows zero-padded up to K).
    gate: (G, K-ish), broadcast over M.  residual added AFTER the (absent)
    activation, so it is only legal with act == "none" (matches torch ordering).
    bf16 MXU operands, f32 accumulation/epilogue, output written in out_dtype
    with N padded to a lane multiple (padded columns are exactly zero pre-act).
    """
    assert a.ndim == 3 and b.ndim == 2
    G, M, K = a.shape
    Kb, N = b.shape
    assert Kb <= K
    assert residual is None or act == "none"

    Kp = _round_up(K, 128)
    Np = _round_up(N, 128)
    Mp, tm = _pick_m_tile(M)
    tk = _pick_cn_tile(Kp)
    tn = _pick_cn_tile(Np)

    a_bf = a.astype(jnp.bfloat16)
    if (Mp, Kp) != (M, K):
        a_bf = jnp.pad(a_bf, ((0, 0), (0, Mp - M), (0, Kp - K)))
    b_bf = b.astype(jnp.bfloat16)
    if (Kp, Np) != (Kb, N):
        b_bf = jnp.pad(b_bf, ((0, Kp - Kb), (0, Np - N)))

    sv = jnp.ones((N,), jnp.float32) if scale is None else scale.astype(jnp.float32)
    cv = jnp.zeros((N,), jnp.float32) if shift is None else shift.astype(jnp.float32)
    sv = jnp.pad(sv, (0, Np - N)).reshape(1, Np)
    cv = jnp.pad(cv, (0, Np - N)).reshape(1, Np)

    args = [a_bf, b_bf, sv, cv]
    has_gate = gate is not None
    if has_gate:
        gt = gate.astype(jnp.bfloat16)
        if gt.shape[1] != Kp:
            gt = jnp.pad(gt, ((0, 0), (0, Kp - gt.shape[1])))
        args.append(gt.reshape(G, 1, Kp))
    has_res = residual is not None
    if has_res:
        r = residual.astype(jnp.bfloat16)
        if r.shape != (G, Mp, Np):
            r = jnp.pad(r, ((0, 0), (0, Mp - r.shape[1]), (0, Np - r.shape[2])))
        args.append(r)

    call = _matmul_call(G, Mp, Np, Kp, tm, tn, tk, act, has_gate, has_res,
                        jnp.dtype(out_dtype).name)
    out = call(*args)
    if Mp != M:
        out = out[:, :M, :]
    return out                                   # (G, M, Np) -- padded channels kept


def _bn_fold(bn):
    scale = bn["gamma"] / jnp.sqrt(bn["var"] + BN_EPS)
    shift = bn["beta"] - bn["mean"] * scale
    return scale, shift


def conv_bn_act(x, w, bn, stride, pad, act="silu"):
    """Dense k x k conv (taps folded into the matmul K) + fused BN + activation.

    x: (B, H, W, Cx) NHWC (Cx may be a 128-padded channel count; padded channels
    are zero).  w: (k, k, Cin_logical, Cout_logical).
    Returns (B, Ho, Wo, round_up(Cout, 128)) bf16.
    """
    k = w.shape[0]
    Cin_l, Cout_l = w.shape[2], w.shape[3]
    B, H, W, Cx = x.shape
    scale, shift = _bn_fold(bn)
    if Cx != Cin_l:                              # channel-padded activation
        w = jnp.pad(w, ((0, 0), (0, 0), (0, Cx - Cin_l), (0, 0)))
    xp = jnp.pad(x, ((0, 0), (pad, pad), (pad, pad), (0, 0)))
    Ho = (H + 2 * pad - k) // stride + 1
    Wo = (W + 2 * pad - k) // stride + 1
    # TODO(synk): halo-tiled dense conv would avoid materializing the k^2 im2col.
    taps = [xp[:, kh:kh + (Ho - 1) * stride + 1:stride,
               kw:kw + (Wo - 1) * stride + 1:stride, :]
            for kh in range(k) for kw in range(k)]
    A = jnp.concatenate(taps, axis=-1).reshape(1, B * Ho * Wo, k * k * Cx)
    wmat = w.reshape(k * k * Cx, Cout_l)
    out = fused_matmul(A, wmat, scale=scale, shift=shift, act=act)
    return out.reshape(B, Ho, Wo, out.shape[-1])


def depthwise_conv_bn_silu(x, w, bn, stride, pad):
    """Depthwise conv + fused BN + SiLU + fused global average pool.

    x: (B, H, W, Cp) bf16 channel-padded activation; w: (k, k, C_logical).
    The padded input is split into stride^2 phases (a partition, not a copy),
    so every tap inside the kernel is a static unit-stride slice of the
    VMEM-resident plane -- no k^2 im2col materialization in HBM.
    Returns (y, pooled): y (B, Ho, Wo, Cp) bf16, pooled (B, Cp) f32.
    """
    k = w.shape[0]
    C_l = w.shape[2]
    B, H, W, Cp = x.shape
    s = stride
    Ho = (H + 2 * pad - k) // s + 1
    Wo = (W + 2 * pad - k) // s + 1
    Hq = (k - 1) // s + Ho
    Wq = (k - 1) // s + Wo
    pad_b = Hq * s - H - pad
    pad_r = Wq * s - W - pad
    assert pad_b >= pad and pad_r >= pad
    xp = jnp.pad(x.astype(jnp.bfloat16),
                 ((0, 0), (pad, pad_b), (pad, pad_r), (0, 0)))
    if s == 1:
        xph = xp.reshape(B, 1, Hq, Wq, Cp)
    else:
        phases = [xp[:, i::s, j::s, :] for i in range(s) for j in range(s)]
        xph = jnp.stack(phases, axis=1)          # (B, s*s, Hq, Wq, Cp)
    xph = xph.reshape(B * s * s, Hq, Wq, Cp)

    wt = jnp.pad(w.reshape(k * k, C_l).astype(jnp.float32),
                 ((0, 0), (0, Cp - C_l)))
    scale, shift = _bn_fold(bn)
    sv = jnp.pad(scale.astype(jnp.float32), (0, Cp - C_l)).reshape(1, Cp)
    cv = jnp.pad(shift.astype(jnp.float32), (0, Cp - C_l)).reshape(1, Cp)

    tc = 128
    # TODO(synk): for very large spatial planes, tile output rows with a halo
    # instead of holding the whole (Hq, Wq, tc) plane per grid step.
    y, pooled = _dw_call(B, Cp, Hq, Wq, Ho, Wo, k, s, tc)(xph, wt, sv, cv)
    return y, pooled.reshape(B, Cp)


def global_avg_pool(x3):
    """x3: (B, HW, Cp) bf16 -> (B, Cp) f32, tiled reduction over HW chunks."""
    B, HW, Cp = x3.shape
    tc = 256 if Cp % 256 == 0 else 128
    thw = min(512, _round_up(HW, 8))
    HWp = _round_up(HW, thw)
    xp = x3 if HWp == HW else jnp.pad(x3, ((0, 0), (0, HWp - HW), (0, 0)))
    return pl.pallas_call(
        functools.partial(_pool_kernel, inv_hw=1.0 / HW),
        out_shape=jax.ShapeDtypeStruct((B, Cp), jnp.float32),
        grid=(Cp // tc, HWp // thw),
        in_specs=[pl.BlockSpec((B, thw, tc), lambda c, h: (0, h, c))],
        out_specs=pl.BlockSpec((B, tc), lambda c, h: (0, c)),
        scratch_shapes=[pltpu.VMEM((B, tc), jnp.float32)],
        compiler_params=pltpu.CompilerParams(
            dimension_semantics=("parallel", "arbitrary"),
            vmem_limit_bytes=VMEM_LIMIT),
    )(xp)


def inverted_residual(x, blk):
    p = blk["params"]
    inp = x
    if blk["expand"]:
        x = conv_bn_act(x, p["expand_w"], p["expand_bn"], 1, 1, "silu")

    # depthwise conv + BN + SiLU with the SE global-average-pool fused in
    y, pooled = depthwise_conv_bn_silu(x, p["dw_w"], p["dw_bn"],
                                       blk["stride"], blk["padding"])
    B, Ho, Wo, Cp = y.shape

    # squeeze-excitation gate from the fused pooled stats (two tiny FCs)
    s1 = fused_matmul(pooled.reshape(1, B, Cp), p["se_w1"],
                      shift=p["se_b1"], act="silu")
    gate = fused_matmul(s1, p["se_w2"], shift=p["se_b2"], act="sigmoid")
    gate = gate.reshape(B, -1)                                   # (B, Cp)

    # 1x1 projection + BN (no activation); SE gate and residual add fused
    scale, shift = _bn_fold(p["proj_bn"])
    HW = Ho * Wo
    res = inp.reshape(B, HW, inp.shape[-1]) if blk["use_residual"] else None
    # TODO(synk): stochastic depth is training-only (no-op in eval mode)
    out = fused_matmul(y.reshape(B, HW, Cp), p["proj_w"], scale=scale,
                       shift=shift, act="none", gate=gate, residual=res)
    return out.reshape(B, Ho, Wo, out.shape[-1])


# --------------------------------------------------------------------------
# Parameter construction (deterministic, in-script)
# --------------------------------------------------------------------------
def _init_conv(key, k, cin, cout):
    std = (2.0 / (k * k * cin)) ** 0.5
    return jax.random.normal(key, (k, k, cin, cout), jnp.float32) * std


def _init_dwconv(key, k, c):
    std = (2.0 / (k * k)) ** 0.5
    return jax.random.normal(key, (k, k, c), jnp.float32) * std


def _init_linear(key, cin, cout):
    std = (1.0 / cin) ** 0.5
    return jax.random.normal(key, (cin, cout), jnp.float32) * std


def _init_bn(c):
    return dict(gamma=jnp.ones((c,), jnp.float32), beta=jnp.zeros((c,), jnp.float32),
                mean=jnp.zeros((c,), jnp.float32), var=jnp.ones((c,), jnp.float32))


def build_efficientnet(key, version="b0", num_classes=10):
    phi, _res, _drop = phi_values[version]
    depth_factor = 1.2 ** phi
    width_factor = 1.1 ** phi
    last_channels = ceil(1280 * width_factor)
    keys = iter(jax.random.split(key, 256))

    params = {}
    channels = int(32 * width_factor)
    params["stem"] = dict(w=_init_conv(next(keys), 3, 3, channels),
                          bn=_init_bn(channels))

    blocks = []
    in_channels = channels
    for expand_ratio, c, repeats, stride, k in base_model:
        out_channels = 4 * ceil(int(c * width_factor) / 4)
        layers_repeats = ceil(repeats * depth_factor)
        for layer in range(layers_repeats):
            s = stride if layer == 0 else 1
            hidden = in_channels * expand_ratio
            reduced = int(in_channels / 4)
            blk = dict(kernel_size=k, stride=s, padding=k // 2,
                       expand=(in_channels != hidden),
                       use_residual=(in_channels == out_channels and s == 1))
            p = {}
            if blk["expand"]:
                p["expand_w"] = _init_conv(next(keys), 3, in_channels, hidden)
                p["expand_bn"] = _init_bn(hidden)
            p["dw_w"] = _init_dwconv(next(keys), k, hidden)
            p["dw_bn"] = _init_bn(hidden)
            p["se_w1"] = _init_linear(next(keys), hidden, reduced)
            p["se_b1"] = jnp.zeros((reduced,), jnp.float32)
            p["se_w2"] = _init_linear(next(keys), reduced, hidden)
            p["se_b2"] = jnp.zeros((hidden,), jnp.float32)
            p["proj_w"] = _init_conv(next(keys), 1, hidden, out_channels).reshape(
                hidden, out_channels)
            p["proj_bn"] = _init_bn(out_channels)
            blk["params"] = p
            blocks.append(blk)
            in_channels = out_channels
    params["blocks"] = blocks

    params["head"] = dict(
        w=_init_conv(next(keys), 1, in_channels, last_channels).reshape(
            in_channels, last_channels),
        bn=_init_bn(last_channels))
    params["fc_w"] = _init_linear(next(keys), last_channels, num_classes)
    params["fc_b"] = jnp.zeros((num_classes,), jnp.float32)
    params["num_classes"] = num_classes
    return params


# --------------------------------------------------------------------------
# Full forward pass (eval mode)
# --------------------------------------------------------------------------
def efficientnet_forward(params, x_nchw):
    x = jnp.transpose(x_nchw.astype(jnp.float32), (0, 2, 3, 1))   # NCHW -> NHWC
    x = conv_bn_act(x, params["stem"]["w"], params["stem"]["bn"], 2, 1, "silu")
    for blk in params["blocks"]:
        x = inverted_residual(x, blk)

    # head: 1x1 CNNBlock (matmul with fused BN + SiLU epilogue, bf16 output)
    B, H, W, Cx = x.shape
    scale, shift = _bn_fold(params["head"]["bn"])
    y = fused_matmul(x.reshape(1, B * H * W, Cx), params["head"]["w"],
                     scale=scale, shift=shift, act="silu")
    Ch = y.shape[-1]

    # global average pool (tiled reduction)
    pooled = global_avg_pool(y.reshape(B, H * W, Ch))              # (B, Ch)

    # TODO(synk): dropout is training-only (no-op in eval mode)
    nc = params["num_classes"]
    logits = fused_matmul(pooled.reshape(1, B, Ch), params["fc_w"],
                          shift=params["fc_b"], act="none",
                          out_dtype=jnp.float32)
    return logits.reshape(B, -1)[:, :nc]


# --------------------------------------------------------------------------
if __name__ == "__main__":
    key = jax.random.PRNGKey(0)
    key_params, key_x = jax.random.split(key)

    num_classes = 10
    params = build_efficientnet(key_params, version="b0", num_classes=num_classes)

    # small input consistent with the module: NCHW, 3 input channels
    x = jax.random.normal(key_x, (2, 3, 32, 32), jnp.float32)

    logits = efficientnet_forward(params, x)
    logits = jax.block_until_ready(logits)

    assert logits.shape == (2, num_classes), logits.shape
    assert bool(jnp.all(jnp.isfinite(logits)))
    print("KERNEL_OK")
</pallas_src>

<mosaic_0001>
module attributes {stable_mosaic.version = 11 : i64} {
  func.func @_mm_kernel(%arg0: i32, %arg1: i32, %arg2: i32, %arg3: i32, %arg4: memref<1x512x128xbf16, #tpu.memory_space<vmem>>, %arg5: memref<128x128xbf16, #tpu.memory_space<vmem>>, %arg6: memref<1x128xf32, #tpu.memory_space<vmem>>, %arg7: memref<1x128xf32, #tpu.memory_space<vmem>>, %arg8: memref<1x512x128xbf16, #tpu.memory_space<vmem>>, %arg9: memref<512x128xf32, #tpu.memory_space<vmem>>) attributes {dimension_semantics = [#tpu.dimension_semantics<parallel>, #tpu.dimension_semantics<parallel>, #tpu.dimension_semantics<parallel>, #tpu.dimension_semantics<arbitrary>], iteration_bounds = array<i64: 1, 1, 1, 1>, scalar_prefetch = 0 : i64, scratch_operands = 1 : i64, tpu.core_type = #tpu.core_type<tc>, window_params = [{transform_indices = @transform_0, window_bounds = array<i64: 1, 512, 128>}, {transform_indices = @transform_1, window_bounds = array<i64: 128, 128>}, {transform_indices = @transform_2, window_bounds = array<i64: 1, 128>}, {transform_indices = @transform_3, window_bounds = array<i64: 1, 128>}, {transform_indices = @transform_4, window_bounds = array<i64: 1, 512, 128>}]} {
    %c0_i32 = arith.constant 0 : i32
    %0 = arith.cmpi eq, %arg3, %c0_i32 : i32
    %1 = arith.extui %0 : i1 to i32
    %c0_i32_0 = arith.constant 0 : i32
    %2 = arith.cmpi ne, %1, %c0_i32_0 : i32
    scf.if %2 {
      %cst_11 = arith.constant 0.000000e+00 : f32
      %13 = vector.broadcast %cst_11 : f32 to vector<512x128xf32>
      %c0_12 = arith.constant 0 : index
      %c0_13 = arith.constant 0 : index
      %14 = vector.load %arg9[%c0_12, %c0_13] : memref<512x128xf32, #tpu.memory_space<vmem>>, vector<512x128xf32>
      tpu.vector_store %arg9[%c0_12, %c0_13], %13 {strides = array<i32>} : memref<512x128xf32, #tpu.memory_space<vmem>>, vector<512x128xf32>,
    } else {
    }
    %c0 = arith.constant 0 : index
    %c0_1 = arith.constant 0 : index
    %c0_2 = arith.constant 0 : index
    %3 = vector.load %arg4[%c0, %c0_1, %c0_2] : memref<1x512x128xbf16, #tpu.memory_space<vmem>>, vector<1x512x128xbf16>
    %4 = vector.shape_cast %3 : vector<1x512x128xbf16> to vector<512x128xbf16>
    %c0_3 = arith.constant 0 : index
    %c0_4 = arith.constant 0 : index
    %5 = vector.load %arg9[%c0_3, %c0_4] : memref<512x128xf32, #tpu.memory_space<vmem>>, vector<512x128xf32>
    %c0_5 = arith.constant 0 : index
    %c0_6 = arith.constant 0 : index
    %6 = vector.load %arg5[%c0_5, %c0_6] : memref<128x128xbf16, #tpu.memory_space<vmem>>, vector<128x128xbf16>
    %cst = arith.constant dense<0.000000e+00> : vector<512x128xf32>
    %7 = tpu.matmul %4, %6, %cst {dimension_numbers = #tpu.dot_dimension_numbers<[1], [0], [0], [1], [0, 0, 1, 1], [], []>} : vector<512x128xbf16>, vector<128x128xbf16>, vector<512x128xf32> -> vector<512x128xf32>
    %8 = arith.addf %5, %7 : vector<512x128xf32>
    %c0_7 = arith.constant 0 : index
    %c0_8 = arith.constant 0 : index
    %9 = vector.load %arg9[%c0_7, %c0_8] : memref<512x128xf32, #tpu.memory_space<vmem>>, vector<512x128xf32>
    tpu.vector_store %arg9[%c0_7, %c0_8], %8 {strides = array<i32>} : memref<512x128xf32, #tpu.memory_space<vmem>>, vector<512x128xf32>,
    %c0_i32_9 = arith.constant 0 : i32
    %10 = arith.cmpi eq, %arg3, %c0_i32_9 : i32
    %11 = arith.extui %10 : i1 to i32
    %c0_i32_10 = arith.constant 0 : i32
    %12 = arith.cmpi ne, %11, %c0_i32_10 : i32
    scf.if %12 {
      %c0_11 = arith.constant 0 : index
      %c0_12 = arith.constant 0 : index
      %13 = vector.load %arg9[%c0_11, %c0_12] : memref<512x128xf32, #tpu.memory_space<vmem>>, vector<512x128xf32>
      %c0_13 = arith.constant 0 : index
      %c0_14 = arith.constant 0 : index
      %14 = vector.load %arg6[%c0_13, %c0_14] : memref<1x128xf32, #tpu.memory_space<vmem>>, vector<1x128xf32>
      %15 = vector.broadcast %14 : vector<1x128xf32> to vector<512x128xf32>
      %16 = arith.mulf %13, %15 : vector<512x128xf32>
      %c0_15 = arith.constant 0 : index
      %c0_16 = arith.constant 0 : index
      %17 = vector.load %arg7[%c0_15, %c0_16] : memref<1x128xf32, #tpu.memory_space<vmem>>, vector<1x128xf32>
      %18 = vector.broadcast %17 : vector<1x128xf32> to vector<512x128xf32>
      %19 = arith.addf %16, %18 : vector<512x128xf32>
      %20 = arith.negf %19 : vector<512x128xf32>
      %21 = math.exp %20 : vector<512x128xf32>
      %cst_17 = arith.constant 1.000000e+00 : f32
      %22 = vector.broadcast %cst_17 : f32 to vector<512x128xf32>
      %23 = arith.addf %22, %21 : vector<512x128xf32>
      %24 = arith.divf %22, %23 : vector<512x128xf32>
      %25 = arith.mulf %19, %24 : vector<512x128xf32>
      %26 = arith.truncf %25 : vector<512x128xf32> to vector<512x128xbf16>
      %c0_18 = arith.constant 0 : index
      %c0_19 = arith.constant 0 : index
      %c0_20 = arith.constant 0 : index
      %27 = vector.load %arg8[%c0_18, %c0_19, %c0_20] : memref<1x512x128xbf16, #tpu.memory_space<vmem>>, vector<1x512x128xbf16>
      %28 = vector.shape_cast %27 : vector<1x512x128xbf16> to vector<512x128xbf16>
      %29 = vector.shape_cast %26 : vector<512x128xbf16> to vector<1x512x128xbf16>
      tpu.vector_store %arg8[%c0_18, %c0_19, %c0_20], %29 {strides = array<i32>} : memref<1x512x128xbf16, #tpu.memory_space<vmem>>, vector<1x512x128xbf16>,
    } else {
    }
    return
  }
  func.func @transform_0(%arg0: i32, %arg1: i32, %arg2: i32, %arg3: i32) -> (i32, i32, i32) {
    %c0_i32 = arith.constant 0 : i32
    return %arg0, %arg1, %arg3 : i32, i32, i32
  }
  func.func @transform_1(%arg0: i32, %arg1: i32, %arg2: i32, %arg3: i32) -> (i32, i32) {
    %c0_i32 = arith.constant 0 : i32
    return %arg3, %arg2 : i32, i32
  }
  func.func @transform_2(%arg0: i32, %arg1: i32, %arg2: i32, %arg3: i32) -> (i32, i32) {
    %c0_i32 = arith.constant 0 : i32
    %c0_i32_0 = arith.constant 0 : i32
    return %c0_i32, %arg2 : i32, i32
  }
  func.func @transform_3(%arg0: i32, %arg1: i32, %arg2: i32, %arg3: i32) -> (i32, i32) {
    %c0_i32 = arith.constant 0 : i32
    %c0_i32_0 = arith.constant 0 : i32
    return %c0_i32, %arg2 : i32, i32
  }
  func.func @transform_4(%arg0: i32, %arg1: i32, %arg2: i32, %arg3: i32) -> (i32, i32, i32) {
    %c0_i32 = arith.constant 0 : i32
    return %arg0, %arg1, %arg2 : i32, i32, i32
  }
}

</mosaic_0001>

<bundles_post_ra>
// kernel: tpu_custom_call.1
= control target key start
LH: loop header
LB: loop body
LE: loop exit
PB: predicated region body
PF: predicated region fallthrough
CT: control target
= control target key end

     0   :  { %9 = vsyncpa [#allocation4], 0  ;;  %s3449_s0 = inlined_call_operand.hbm [shape: bf16[1,512,128], index: 0, kind: input, shape index: {}]   ;;  %s3450_s1 = inlined_call_operand.hbm [shape: bf16[128,128], index: 1, kind: input, shape index: {}]   ;;  %s3451_s2 = inlined_call_operand.vmem [shape: f32[1,128], index: 2, kind: input, shape index: {}]   ;;  %s3452_s3 = inlined_call_operand.vmem [shape: f32[1,128], index: 3, kind: input, shape index: {}]   ;;  %s3453_s4 = inlined_call_operand.hbm [shape: bf16[1,512,128], index: 4, kind: output, shape index: {}]  }
   0x1   :  { %10 = vsyncpa [#allocation7], 0 }
   0x2   :  { %11 = vsyncpa [#allocation5], 0  ;;  %s2847_s15 = smov [#allocation3]   ;;  %s2775_s19 = scalar_lea.hbm %s3449_s0, 4096 }
   0x3   :  { %s17_s16 = sshll.u32 %s2847_s15, 4  ;;  %p2776_p0 = scmp.ne.s32.totalorder %s3449_s0, %s2775_s19  ;;  %s18_s16 = int_to_ptr.vmem [resolvable:$true] %s17_s16 }
   0x4   :  { %p2779_p1 = scmp.lt.u32.totalorder %s2775_s19, %s3449_s0 }
   0x6   :  { %p2781_p2 = pnand %p2779_p1, %p2776_p0 }
   0x8   :  { %2784 = shalt.err (!%p2781_p2)
}
   0x9   :  { %s2785_s24 = scalar_lea.vmem %s18_s16, 4096  ;;  %p2790_p4 = scmp.lt.s32.totalorder %s18_s16, %s18_s16 }
   0xa   :  { %p2786_p3 = scmp.ne.s32.totalorder %s18_s16, %s2785_s24  ;;  %p2791_p5 = scmp.lt.s32.totalorder %s2785_s24, %s2785_s24 }
   0xc   :  { %p2792_p6 = por %p2791_p5, %p2790_p4 }
   0xe   :  { %p2793_p7 = pnand %p2792_p6, %p2786_p3 }
  0x10   :  { %2796 = shalt.err (!%p2793_p7)
}
  0x11   :  { %s2848_s25 = smov 64   ;;  %s2849_s26 = smov 4  }
  0x12   :  { %23 = dma.hbm_to_vmem [thread:$0]  %s3449_s0, 4096, %s18_s16, [#allocation4], %s2848_s25, %s2848_s25, %s2849_s26  }
  0x13   :  { %s2850_s29 = smov [#allocation6]   ;;  %s2797_s7 = scalar_lea.hbm %s3450_s1, 1024 }
  0x14   :  { %s29_s30 = sshll.u32 %s2850_s29, 4  ;;  %p2798_p8 = scmp.ne.s32.totalorder %s3450_s1, %s2797_s7  ;;  %s30_s30 = int_to_ptr.vmem [resolvable:$true] %s29_s30 }
  0x15   :  { %p2801_p9 = scmp.lt.u32.totalorder %s2797_s7, %s3450_s1 }
  0x17   :  { %p2803_p10 = pnand %p2801_p9, %p2798_p8 }
  0x19   :  { %2806 = shalt.err (!%p2803_p10)
}
  0x1a   :  { %s2807_s12 = scalar_lea.vmem %s30_s30, 1024  ;;  %p2812_p12 = scmp.lt.s32.totalorder %s30_s30, %s30_s30 }
  0x1b   :  { %p2808_p11 = scmp.ne.s32.totalorder %s30_s30, %s2807_s12  ;;  %p2813_p13 = scmp.lt.s32.totalorder %s2807_s12, %s2807_s12 }
  0x1d   :  { %p2814_p0 = por %p2813_p13, %p2812_p12 }
  0x1f   :  { %p2815_p1 = pnand %p2814_p0, %p2808_p11 }
  0x21   :  { %2818 = shalt.err (!%p2815_p1)
}
  0x22   :  { %35 = dma.hbm_to_vmem [thread:$0]  %s3450_s1, 1024, %s30_s30, [#allocation7], %s2848_s25, %s2848_s25, %s2849_s26  }
  0x23   :  { %2841 = dma.done.wait [#allocation4], 4096  }
  0x24   :  { %2842 = vsyncadd [#allocation4], 4294963200 }
  0x25   :  { %2843 = dma.done.wait [#allocation7], 1024  }
  0x26   :  { %2844 = vsyncadd [#allocation7], 4294966272  ;;  %v2477_v0 = vld [vmem:[#allocation6] sm:$0xff]   ;;  %v2478_v1 = vld [vmem:[#allocation6 + $0x8] sm:$0xff]  }
  0x27   :  { %2376 = vmatprep.subr.bf16.mxu0 %v2477_v0  ;;  %2456 = vmatprep.subr.bf16.mxu1 %v2477_v0  ;;  %v2479_v2 = vld [vmem:[#allocation6 + $0x10] sm:$0xff]   ;;  %v2480_v3 = vld [vmem:[#allocation6 + $0x18] sm:$0xff]   ;;  %v2485_v4 = vld [vmem:[#allocation3] sm:$0xff]  }
  0x28   :  { %2377 = vmatpush3.bf16.msra.mxu0 %v2477_v0  ;;  %2464 = vmatpush3.bf16.msra.mxu1 %v2477_v0  ;;  %v2486_v5 = vld [vmem:[#allocation3 + $0x80] sm:$0xff]   ;;  %v2482_v7 = vld [vmem:[#allocation6 + $0x28] sm:$0xff]   ;;  %v2483_v8 = vld [vmem:[#allocation6 + $0x30] sm:$0xff]  }
  0x29   :  { %2378 = vmatprep.subr.bf16.mxu0 %v2478_v1  ;;  %2457 = vmatprep.subr.bf16.mxu1 %v2478_v1  ;;  %v2481_v6 = vld [vmem:[#allocation6 + $0x20] sm:$0xff]   ;;  %v2484_v9 = vld [vmem:[#allocation6 + $0x38] sm:$0xff]   ;;  %v2487_v10 = vld [vmem:[#allocation3 + $0x8] sm:$0xff]  }
  0x2a   :  { %2392 = vmatprep.mubr.bf16.mxu0 %v2485_v4  ;;  %2424 = vmatprep.mubr.bf16.mxu1 %v2486_v5  ;;  %v2488_v11 = vld [vmem:[#allocation3 + $0x88] sm:$0xff]   ;;  %v2489_v12 = vld [vmem:[#allocation3 + $0x10] sm:$0xff]   ;;  %v2491_v14 = vld [vmem:[#allocation3 + $0x18] sm:$0xff]  }
  0x2b   :  { %v2490_v13 = vld [vmem:[#allocation3 + $0x90] sm:$0xff]   ;;  %v2492_v15 = vld [vmem:[#allocation3 + $0x98] sm:$0xff]   ;;  %v2493_v16 = vld [vmem:[#allocation3 + $0x20] sm:$0xff]  }
  0x2c   :  { %2379 = vmatpush3.bf16.msra.mxu0 %v2478_v1  ;;  %2465 = vmatpush3.bf16.msra.mxu1 %v2478_v1  ;;  %v2494_v17 = vld [vmem:[#allocation3 + $0xa0] sm:$0xff]   ;;  %v2495_v18 = vld [vmem:[#allocation3 + $0x28] sm:$0xff]   ;;  %v2497_v20 = vld [vmem:[#allocation3 + $0x30] sm:$0xff]  }
  0x2d   :  { %2380 = vmatprep.subr.bf16.mxu0 %v2479_v2  ;;  %2458 = vmatprep.subr.bf16.mxu1 %v2479_v2  ;;  %v2496_v19 = vld [vmem:[#allocation3 + $0xa8] sm:$0xff]   ;;  %v2498_v21 = vld [vmem:[#allocation3 + $0xb0] sm:$0xff]   ;;  %v2499_v22 = vld [vmem:[#allocation3 + $0x38] sm:$0xff]  }
  0x2e   :  { %v2500_v23 = vld [vmem:[#allocation3 + $0xb8] sm:$0xff]   ;;  %v2501_v24 = vld [vmem:[#allocation3 + $0x40] sm:$0xff]   ;;  %v2503_v26 = vld [vmem:[#allocation3 + $0x48] sm:$0xff]  }
  0x2f   :  { %v2502_v25 = vld [vmem:[#allocation3 + $0xc0] sm:$0xff]   ;;  %v2504_v27 = vld [vmem:[#allocation3 + $0xc8] sm:$0xff]   ;;  %v2505_v28 = vld [vmem:[#allocation3 + $0x50] sm:$0xff]  }
  0x30   :  { %2381 = vmatpush3.bf16.msra.mxu0 %v2479_v2  ;;  %2466 = vmatpush3.bf16.msra.mxu1 %v2479_v2  ;;  %v2506_v29 = vld [vmem:[#allocation3 + $0xd0] sm:$0xff]   ;;  %v2507_v30 = vld [vmem:[#allocation3 + $0x58] sm:$0xff]   ;;  %v2509_v32 = vld [vmem:[#allocation3 + $0x60] sm:$0xff]  }
  0x31   :  { %2382 = vmatprep.subr.bf16.mxu0 %v2480_v3  ;;  %2459 = vmatprep.subr.bf16.mxu1 %v2480_v3  ;;  %v2508_v31 = vld [vmem:[#allocation3 + $0xd8] sm:$0xff]   ;;  %v2510_v33 = vld [vmem:[#allocation3 + $0xe0] sm:$0xff]   ;;  %v2511_v34 = vld [vmem:[#allocation3 + $0x68] sm:$0xff]  }
  0x32   :  { %v2512_v35 = vld [vmem:[#allocation3 + $0xe8] sm:$0xff]   ;;  %v2513_v36 = vld [vmem:[#allocation3 + $0x70] sm:$0xff]   ;;  %v2515_v38 = vld [vmem:[#allocation3 + $0x78] sm:$0xff]  }
  0x33   :  { %v2514_v37 = vld [vmem:[#allocation3 + $0xf0] sm:$0xff]   ;;  %v2516_v39 = vld [vmem:[#allocation3 + $0xf8] sm:$0xff]   ;;  %v2910_v40 = vld [vmem:[%s3451_s2] ss:$0 sm:$0xff] }
  0x34   :  { %2383 = vmatpush3.bf16.msra.mxu0 %v2480_v3  ;;  %2467 = vmatpush3.bf16.msra.mxu1 %v2480_v3  ;;  %v2915_v42 = vld [vmem:[%s3452_s3] ss:$0 sm:$0xff] }
  0x35   :  { %2384 = vmatprep.subr.bf16.mxu0 %v2481_v6  ;;  %2460 = vmatprep.subr.bf16.mxu1 %v2481_v6 }
  0x38   :  { %2385 = vmatpush3.bf16.msra.mxu0 %v2481_v6  ;;  %2468 = vmatpush3.bf16.msra.mxu1 %v2481_v6 }
  0x39   :  { %2386 = vmatprep.subr.bf16.mxu0 %v2482_v7  ;;  %2461 = vmatprep.subr.bf16.mxu1 %v2482_v7 }
  0x3c   :  { %2387 = vmatpush3.bf16.msra.mxu0 %v2482_v7  ;;  %2469 = vmatpush3.bf16.msra.mxu1 %v2482_v7 }
  0x3d   :  { %2388 = vmatprep.subr.bf16.mxu0 %v2483_v8  ;;  %2462 = vmatprep.subr.bf16.mxu1 %v2483_v8 }
  0x40   :  { %2389 = vmatpush3.bf16.msra.mxu0 %v2483_v8  ;;  %2470 = vmatpush3.bf16.msra.mxu1 %v2483_v8 }
  0x41   :  { %2390 = vmatprep.subr.bf16.mxu0 %v2484_v9  ;;  %2463 = vmatprep.subr.bf16.mxu1 %v2484_v9 }
  0x44   :  { %2391 = vmatpush3.bf16.msra.mxu0 %v2484_v9  ;;  %2471 = vmatpush3.bf16.msra.mxu1 %v2484_v9 }
  0x47   :  { %2393 = vmatmul.mubr.bf16.vlgmr.msra.gmra.mrb[0].mxu0 %v2487_v10  ;;  %2425 = vmatmul.mubr.bf16.vlgmr.msra.gmra.mrb[0].mxu1 %v2488_v11 }
  0x48   :  { %2396 = vmatprep.mubr.bf16.mxu0 %v2489_v12  ;;  %2428 = vmatprep.mubr.bf16.mxu1 %v2490_v13 }
  0x4f   :  { %2397 = vmatmul.mubr.bf16.gmra.mrb[4].mxu0 %v2491_v14  ;;  %2429 = vmatmul.mubr.bf16.gmra.mrb[4].mxu1 %v2492_v15 }
  0x50   :  { %2400 = vmatprep.mubr.bf16.mxu0 %v2493_v16  ;;  %2432 = vmatprep.mubr.bf16.mxu1 %v2494_v17 }
  0x57   :  { %2401 = vmatmul.mubr.bf16.gmra.mrb[8].mxu0 %v2495_v18  ;;  %2433 = vmatmul.mubr.bf16.gmra.mrb[8].mxu1 %v2496_v19 }
  0x58   :  { %2404 = vmatprep.mubr.bf16.mxu0 %v2497_v20  ;;  %2436 = vmatprep.mubr.bf16.mxu1 %v2498_v21 }
  0x5f   :  { %2405 = vmatmul.mubr.bf16.gmra.mrb[12].mxu0 %v2499_v22  ;;  %2437 = vmatmul.mubr.bf16.gmra.mrb[12].mxu1 %v2500_v23 }
  0x60   :  { %2408 = vmatprep.mubr.bf16.mxu0 %v2501_v24  ;;  %2440 = vmatprep.mubr.bf16.mxu1 %v2502_v25 }
  0x67   :  { %2409 = vmatmul.mubr.bf16.gmra.mrb[16].mxu0 %v2503_v26  ;;  %2441 = vmatmul.mubr.bf16.gmra.mrb[16].mxu1 %v2504_v27 }
  0x68   :  { %2412 = vmatprep.mubr.bf16.mxu0 %v2505_v28  ;;  %2444 = vmatprep.mubr.bf16.mxu1 %v2506_v29 }
  0x6f   :  { %2413 = vmatmul.mubr.bf16.gmra.mrb[20].mxu0 %v2507_v30  ;;  %2445 = vmatmul.mubr.bf16.gmra.mrb[20].mxu1 %v2508_v31 }
  0x70   :  { %2416 = vmatprep.mubr.bf16.mxu0 %v2509_v32  ;;  %2448 = vmatprep.mubr.bf16.mxu1 %v2510_v33 }
  0x77   :  { %2417 = vmatmul.mubr.bf16.gmra.mrb[24].mxu0 %v2511_v34  ;;  %2449 = vmatmul.mubr.bf16.gmra.mrb[24].mxu1 %v2512_v35 }
  0x78   :  { %2420 = vmatprep.mubr.bf16.mxu0 %v2513_v36  ;;  %2452 = vmatprep.mubr.bf16.mxu1 %v2514_v37 }
  0x7f   :  { %2421 = vmatmul.mubr.bf16.gmra.mrb[28].mxu0 %v2515_v38  ;;  %2453 = vmatmul.mubr.bf16.gmra.mrb[28].mxu1 %v2516_v39 }
 0x11a   :  { %v2394_v41 = vpop.f32.mrb[0].mxu0  ;;  %v2426_v43 = vpop.f32.mrb[0].mxu1 }
 0x11b   :  { %v992_v44 = vmul.f32 %v2394_v41, %v2910_v40  ;;  %v1024_v45 = vmul.f32 %v2426_v43, %v2910_v40  ;;  %v533_v46 = vpop.f32.mrb[1].mxu0  ;;  %v661_v47 = vpop.f32.mrb[1].mxu1 }
 0x11c   :  { %v990_v48 = vmul.f32 %v2910_v40, %v533_v46  ;;  %v1022_v49 = vmul.f32 %v2910_v40, %v661_v47  ;;  %v2395_v50 = vpop.f32.mrb[2].mxu0  ;;  %v2427_v51 = vpop.f32.mrb[2].mxu1 }
 0x11d   :  { %v2922_v52 = vadd.f32 %v2915_v42, %v992_v44  ;;  %v2925_v53 = vadd.f32 %v2915_v42, %v1024_v45  ;;  %v993_v54 = vmul.f32 %v2395_v50, %v2910_v40  ;;  %v1025_v55 = vmul.f32 %v2427_v51, %v2910_v40  ;;  %v536_v56 = vpop.f32.mrb[3].mxu0  ;;  %v664_v57 = vpop.f32.mrb[3].mxu1 }
 0x11e   :  { %v2930_v58 = vadd.f32 %v2915_v42, %v990_v48  ;;  %v2933_v59 = vadd.f32 %v2915_v42, %v1022_v49  ;;  %v991_v60 = vmul.f32 %v2910_v40, %v536_v56  ;;  %v1023_v61 = vmul.f32 %v2910_v40, %v664_v57 }
 0x11f   :  { %v1955_v62 = vmul.f32 -1.442695, %v2922_v52  ;;  %v1987_v63 = vmul.f32 -1.442695, %v2925_v53  ;;  %v2940_v0 = vadd.f32 %v2915_v42, %v993_v54  ;;  %v2943_v1 = vadd.f32 %v2915_v42, %v1025_v55 }
 0x120   :  { %v1953_v2 = vmul.f32 -1.442695, %v2930_v58  ;;  %v1985_v3 = vmul.f32 -1.442695, %v2933_v59  ;;  %v2948_v4 = vadd.f32 %v2915_v42, %v991_v60  ;;  %v2951_v5 = vadd.f32 %v2915_v42, %v1023_v61 }
 0x121   :  { %2517 = vpow2.f32 %v1955_v62  ;;  %v1956_v6 = vmul.f32 -1.442695, %v2940_v0  ;;  %v1988_v7 = vmul.f32 -1.442695, %v2943_v1 }
 0x122   :  { %2519 = vpow2.f32 %v1987_v63  ;;  %v2398_v8 = vpop.f32.mrb[4].mxu0  ;;  %v2430_v9 = vpop.f32.mrb[4].mxu1  ;;  %v1954_v10 = vmul.f32 -1.442695, %v2948_v4  ;;  %v1986_v15 = vmul.f32 -1.442695, %v2951_v5 }
 0x123   :  { %2521 = vpow2.f32 %v1953_v2  ;;  %v996_v11 = vmul.f32 %v2398_v8, %v2910_v40  ;;  %v1028_v12 = vmul.f32 %v2430_v9, %v2910_v40  ;;  %v549_v13 = vpop.f32.mrb[5].mxu0  ;;  %v677_v14 = vpop.f32.mrb[5].mxu1 }
 0x124   :  { %2523 = vpow2.f32 %v1985_v3  ;;  %v994_v16 = vmul.f32 %v2910_v40, %v549_v13  ;;  %v1026_v17 = vmul.f32 %v2910_v40, %v677_v14  ;;  %v2399_v18 = vpop.f32.mrb[6].mxu0  ;;  %v2431_v19 = vpop.f32.mrb[6].mxu1 }
 0x125   :  { %2525 = vpow2.f32 %v1956_v6  ;;  %v2962_v20 = vadd.f32 %v2915_v42, %v996_v11  ;;  %v2965_v21 = vadd.f32 %v2915_v42, %v1028_v12  ;;  %v997_v22 = vmul.f32 %v2399_v18, %v2910_v40  ;;  %v552_v23 = vpop.f32.mrb[7].mxu0  ;;  %v680_v24 = vpop.f32.mrb[7].mxu1 }
 0x126   :  { %2527 = vpow2.f32 %v1988_v7  ;;  %v2969_v25 = vadd.f32 %v2915_v42, %v994_v16  ;;  %v2972_v26 = vadd.f32 %v2915_v42, %v1026_v17  ;;  %v1029_v27 = vmul.f32 %v2431_v19, %v2910_v40 }
 0x127   :  { %2529 = vpow2.f32 %v1954_v10  ;;  %v1959_v28 = vmul.f32 -1.442695, %v2962_v20  ;;  %v1991_v29 = vmul.f32 -1.442695, %v2965_v21  ;;  %v2978_v30 = vadd.f32 %v2915_v42, %v997_v22 }
 0x128   :  { %2531 = vpow2.f32 %v1986_v15  ;;  %v1957_v31 = vmul.f32 -1.442695, %v2969_v25  ;;  %v1989_v32 = vmul.f32 -1.442695, %v2972_v26  ;;  %v995_v34 = vmul.f32 %v2910_v40, %v552_v23 }
 0x129   :  { %2533 = vpow2.f32 %v1959_v28  ;;  %v1960_v33 = vmul.f32 -1.442695, %v2978_v30  ;;  %v2985_v38 = vadd.f32 %v2915_v42, %v1029_v27  ;;  %v1027_v45 = vmul.f32 %v2910_v40, %v680_v24 }
 0x12a   :  { %2535 = vpow2.f32 %v1991_v29  ;;  %v2402_v35 = vpop.f32.mrb[8].mxu0  ;;  %v2434_v36 = vpop.f32.mrb[8].mxu1  ;;  %v2989_v55 = vadd.f32 %v2915_v42, %v995_v34 }
 0x12b   :  { %v2518_v37 = vpop.eup %2517  ;;  %2537 = vpow2.f32 %v1957_v31  ;;  %v565_v39 = vpop.f32.mrb[9].mxu0  ;;  %v2992_v61 = vmul.f32 -1.442695, %v2985_v38  ;;  %v2995_v2 = vadd.f32 %v2915_v42, %v1027_v45  ;;  %v1000_v3 = vmul.f32 %v2402_v35, %v2910_v40 }
 0x12c   :  { %v693_v41 = vpop.f32.mrb[9].mxu1  ;;  %v2520_v43 = vpop.eup %2519  ;;  %v1319_v44 = vadd.f32 1.0, %v2518_v37  ;;  %2539 = vpow2.f32 %v1989_v32  ;;  %v1032_v8 = vmul.f32 %v2434_v36, %v2910_v40  ;;  %v998_v9 = vmul.f32 %v2910_v40, %v565_v39 }
 0x12d   :  { %v2403_v46 = vpop.f32.mrb[10].mxu0  ;;  %v2435_v47 = vpop.f32.mrb[10].mxu1  ;;  %v1351_v49 = vadd.f32 1.0, %v2520_v43  ;;  %2541 = vpow2.f32 %v1960_v33  ;;  %v1958_v12 = vmul.f32 -1.442695, %v2989_v55  ;;  %v1030_v13 = vmul.f32 %v2910_v40, %v693_v41 }
 0x12e   :  { %v2522_v48 = vpop.eup %2521  ;;  %v568_v50 = vpop.f32.mrb[11].mxu0  ;;  %2543 = vrcp.f32 %v1319_v44  ;;  %v1001_v18 = vmul.f32 %v2403_v46, %v2910_v40  ;;  %v1033_v19 = vmul.f32 %v2435_v47, %v2910_v40  ;;  %v3007_v28 = vadd.f32 %v2915_v42, %v1000_v3 }
 0x12f   :  { %v2524_v51 = vpop.eup %2523  ;;  %v1317_v54 = vadd.f32 1.0, %v2522_v48  ;;  %v696_v56 = vpop.f32.mrb[11].mxu1  ;;  %2545 = vrcp.f32 %v1351_v49  ;;  %v999_v29 = vmul.f32 %v2910_v40, %v568_v50  ;;  %v3015_v35 = vadd.f32 %v2915_v42, %v1032_v8 }
 0x130   :  { %v2526_v57 = vpop.eup %2525  ;;  %v1349_v60 = vadd.f32 1.0, %v2524_v51  ;;  %v3018_v36 = vadd.f32 %v2915_v42, %v998_v9  ;;  %v1990_v44 = vmul.f32 -1.442695, %v2995_v2  ;;  %v3026_v45 = vadd.f32 %v2915_v42, %v1030_v13 }
 0x131   :  { %v2528_v62 = vpop.eup %2527  ;;  %2547 = vrcp.f32 %v1317_v54  ;;  %v1320_v63 = vadd.f32 1.0, %v2526_v57  ;;  %v3029_v48 = vadd.f32 %v2915_v42, %v1001_v18  ;;  %v3032_v49 = vadd.f32 %v2915_v42, %v1033_v19 }
 0x132   :  { %v2530_v6 = vpop.eup %2529  ;;  %2549 = vrcp.f32 %v1349_v60  ;;  %v1352_v7 = vadd.f32 1.0, %v2528_v62  ;;  %v2406_v14 = vpop.f32.mrb[12].mxu0  ;;  %v3035_v54 = vadd.f32 %v2915_v42, %v999_v29  ;;  %v1031_v57 = vmul.f32 %v2910_v40, %v696_v56 }
 0x133   :  { %v2532_v10 = vpop.eup %2531  ;;  %2551 = vrcp.f32 %v1320_v63  ;;  %v1318_v11 = vadd.f32 1.0, %v2530_v6  ;;  %v2438_v15 = vpop.f32.mrb[12].mxu1  ;;  %v1963_v62 = vmul.f32 -1.442695, %v3007_v28  ;;  %v1995_v63 = vmul.f32 -1.442695, %v3015_v35 }
 0x134   :  { %v2534_v16 = vpop.eup %2533  ;;  %2553 = vrcp.f32 %v1352_v7  ;;  %v1350_v17 = vadd.f32 1.0, %v2532_v10  ;;  %v581_v22 = vpop.f32.mrb[13].mxu0  ;;  %v1961_v3 = vmul.f32 -1.442695, %v3018_v36  ;;  %v1993_v7 = vmul.f32 -1.442695, %v3026_v45 }
 0x135   :  { %v3004_v23 = vpop.f32.mrb[13].mxu1  ;;  %v2536_v24 = vpop.eup %2535  ;;  %2555 = vrcp.f32 %v1318_v11  ;;  %v1323_v27 = vadd.f32 1.0, %v2534_v16  ;;  %v1004_v8 = vmul.f32 %v2406_v14, %v2910_v40  ;;  %v1036_v9 = vmul.f32 %v2438_v15, %v2910_v40 }
 0x136   :  { %v3010_v31 = vpop.f32.mrb[14].mxu0  ;;  %v3012_v32 = vpop.f32.mrb[14].mxu1  ;;  %2557 = vrcp.f32 %v1350_v17  ;;  %v1355_v34 = vadd.f32 1.0, %v2536_v24  ;;  %v1964_v13 = vmul.f32 -1.442695, %v3029_v48  ;;  %v3058_v24 = vadd.f32 %v2915_v42, %v1031_v57 }
 0x137   :  { %v2538_v33 = vpop.eup %2537  ;;  %v3020_v37 = vpop.f32.mrb[15].mxu0  ;;  %2559 = vrcp.f32 %v1323_v27  ;;  %v1996_v16 = vmul.f32 -1.442695, %v3032_v49  ;;  %v1962_v15 = vmul.f32 -1.442695, %v3035_v54 }
 0x138   :  { %v3022_v39 = vpop.f32.mrb[15].mxu1  ;;  %v2540_v41 = vpop.eup %2539  ;;  %v1321_v43 = vadd.f32 1.0, %v2538_v33  ;;  %2561 = vrcp.f32 %v1355_v34 }
 0x139   :  { %v2542_v46 = vpop.eup %2541  ;;  %v1353_v47 = vadd.f32 1.0, %v2540_v41  ;;  %v1002_v41 = vmul.f32 %v2910_v40, %v581_v22 }
 0x13a   :  { %v2544_v50 = vpop.eup %2543  ;;  %2563 = vrcp.f32 %v1321_v43  ;;  %v1324_v51 = vadd.f32 1.0, %v2542_v46  ;;  %v3044_v10 = vpop.f32.mrb[16].mxu0 }
 0x13b   :  { %v2546_v60 = vpop.eup %2545  ;;  %2565 = vrcp.f32 %v1353_v47  ;;  %v3046_v11 = vpop.f32.mrb[16].mxu1  ;;  %v1511_v14 = vmul.f32 %v2544_v50, %v2922_v52  ;;  %v3073_v47 = vadd.f32 %v2915_v42, %v1004_v8  ;;  %v3076_v50 = vadd.f32 %v2915_v42, %v1036_v9 }
 0x13c   :  { %v2548_v6 = vpop.eup %2547  ;;  %2567 = vrcp.f32 %v1324_v51  ;;  %v3051_v17 = vpop.f32.mrb[17].mxu0  ;;  %v1543_v33 = vmul.f32 %v2546_v60, %v2925_v53  ;;  %v1994_v9 = vmul.f32 -1.442695, %v3058_v24 }
 0x13d   :  { %v2550_v56 = vpop.eup %2549  ;;  %2569 = vpow2.f32 %v2992_v61  ;;  %v3053_v18 = vpop.f32.mrb[17].mxu1 }
 0x13e   :  { %v2552_v19 = vpop.eup %2551  ;;  %2571 = vpow2.f32 %v1958_v12  ;;  %v3060_v27 = vpop.f32.mrb[18].mxu0  ;;  %v1541_v57 = vmul.f32 %v2550_v56, %v2933_v59 }
 0x13f   :  { %v3062_v61 = vpop.f32.mrb[18].mxu1  ;;  %v2554_v29 = vpop.eup %2553  ;;  %v1512_v34 = vmul.f32 %v2552_v19, %v2940_v0  ;;  %2573 = vpow2.f32 %v1990_v44  ;;  %v1509_v0 = vmul.f32 %v2548_v6, %v2930_v58 }
 0x140   :  { %v3067_v43 = vpop.f32.mrb[19].mxu0  ;;  %v3069_v52 = vpop.f32.mrb[19].mxu1  ;;  %v1544_v46 = vmul.f32 %v2554_v29, %v2943_v1  ;;  %2575 = vpow2.f32 %v1963_v62 }
 0x141   :  { %v2556_v12 = vpop.eup %2555  ;;  %v2153_v44 = vpack.c.bf16 %v1512_v34, %v1511_v14  ;;  %2577 = vpow2.f32 %v1995_v63  ;;  %v1034_v63 = vmul.f32 %v2910_v40, %v3004_v23  ;;  %v3098_v14 = vadd.f32 %v2915_v42, %v1002_v41 }
 0x142   :  { %v2558_v53 = vpop.eup %2557  ;;  %v1510_v22 = vmul.f32 %v2556_v12, %v2948_v4  ;;  %v2233_v60 = vpack.c.bf16 %v1544_v46, %v1543_v33  ;;  %2579 = vpow2.f32 %v1961_v3  ;;  %v1967_v4 = vmul.f32 -1.442695, %v3073_v47  ;;  %v3086_v59 = vpop.f32.mrb[20].mxu0 }
 0x143   :  { %v2560_v51 = vpop.eup %2559  ;;  %v1542_v1 = vmul.f32 %v2558_v53, %v2951_v5  ;;  %2305 = vst [vmem:[#allocation8 + $0x8] sm:$0xff] %v2153_v44   ;;  %2581 = vpow2.f32 %v1993_v7  ;;  %v3088_v6 = vpop.f32.mrb[20].mxu1  ;;  %v1999_v3 = vmul.f32 -1.442695, %v3076_v50  ;;  %v1005_v23 = vmul.f32 %v3010_v31, %v2910_v40 }
 0x144   :  { %v2562_v62 = vpop.eup %2561  ;;  %v2148_v8 = vpack.c.bf16 %v1510_v22, %v1509_v0  ;;  %2321 = vst [vmem:[#allocation8 + $0x88] sm:$0xff] %v2233_v60   ;;  %2583 = vpow2.f32 %v1964_v13  ;;  %v3093_v7 = vpop.f32.mrb[21].mxu0  ;;  %v1515_v34 = vmul.f32 %v2560_v51, %v2962_v20  ;;  %v1037_v46 = vmul.f32 %v3012_v32, %v2910_v40 }
 0x145   :  { %v2564_v19 = vpop.eup %2563  ;;  %v2228_v58 = vpack.c.bf16 %v1542_v1, %v1541_v57  ;;  %2585 = vpow2.f32 %v1996_v16  ;;  %v3095_v56 = vpop.f32.mrb[21].mxu1  ;;  %v3115_v31 = vadd.f32 %v2915_v42, %v1034_v63  ;;  %v3118_v51 = vadd.f32 %v2915_v42, %v1005_v23 }
 0x146   :  { %v3090_v5 = vpop.eup %2565  ;;  %2149 = vst [vmem:[#allocation8] sm:$0xff] %v2148_v8   ;;  %2587 = vpow2.f32 %v1962_v15  ;;  %v3102_v29 = vpop.f32.mrb[22].mxu0  ;;  %v3121_v1 = vmul.f32 -1.442695, %v3098_v14  ;;  %v3124_v8 = vadd.f32 %v2915_v42, %v1037_v46  ;;  %v1003_v63 = vmul.f32 %v2910_v40, %v3020_v37 }
 0x147   :  { %v2568_v13 = vpop.eup %2567  ;;  %2320 = vst [vmem:[#allocation8 + $0x80] sm:$0xff] %v2228_v58   ;;  %v3104_v33 = vpop.f32.mrb[22].mxu1  ;;  %2589 = vpow2.f32 %v1994_v9  ;;  %v3145_v37 = vmul.f32 %v2564_v19, %v2969_v25 }
 0x148   :  { %v2570_v16 = vpop.eup %2569  ;;  %v1516_v12 = vmul.f32 %v2568_v13, %v2978_v30  ;;  %v3110_v15 = vpop.f32.mrb[23].mxu0  ;;  %2591 = vpow2.f32 %v1967_v4  ;;  %v3127_v4 = vmul.f32 -1.442695, %v3115_v31 }
 0x149   :  { %v3112_v41 = vpop.f32.mrb[23].mxu1  ;;  %v2572_v53 = vpop.eup %2571  ;;  %v1356_v0 = vadd.f32 1.0, %v2570_v16  ;;  %2593 = vpow2.f32 %v1999_v3  ;;  %v3136_v16 = vmul.f32 %v2562_v62, %v2965_v21 }
 0x14a   :  { %v2574_v44 = vpop.eup %2573  ;;  %v2163_v22 = vpack.c.bf16 %v1516_v12, %v1515_v34  ;;  %v1322_v57 = vadd.f32 1.0, %v2572_v53  ;;  %v3131_v3 = vpop.f32.mrb[24].mxu0  ;;  %v1035_v12 = vmul.f32 %v2910_v40, %v3022_v39 }
 0x14b   :  { %v2576_v20 = vpop.eup %2575  ;;  %2595 = vrcp.f32 %v1356_v0  ;;  %v1354_v30 = vadd.f32 1.0, %v2574_v44  ;;  %v3133_v13 = vpop.f32.mrb[24].mxu1 }
 0x14c   :  { %v2578_v32 = vpop.eup %2577  ;;  %2307 = vst [vmem:[#allocation8 + $0x18] sm:$0xff] %v2163_v22   ;;  %2597 = vrcp.f32 %v1322_v57  ;;  %v1327_v60 = vadd.f32 1.0, %v2576_v20  ;;  %v3140_v46 = vpop.f32.mrb[25].mxu0  ;;  %v3148_v22 = vmul.f32 -1.442695, %v3118_v51 }
 0x14d   :  { %v2580_v9 = vpop.eup %2579  ;;  %2599 = vrcp.f32 %v1354_v30  ;;  %v1359_v58 = vadd.f32 1.0, %v2578_v32  ;;  %v3142_v53 = vpop.f32.mrb[25].mxu1  ;;  %v3155_v20 = vmul.f32 -1.442695, %v3124_v8  ;;  %v1008_v30 = vmul.f32 %v3044_v10, %v2910_v40 }
 0x14e   :  { %v2582_v23 = vpop.eup %2581  ;;  %2601 = vrcp.f32 %v1327_v60  ;;  %v1325_v34 = vadd.f32 1.0, %v2580_v9  ;;  %v3150_v21 = vpop.f32.mrb[26].mxu0  ;;  %v3165_v60 = vmul.f32 %v3090_v5, %v2972_v26  ;;  %v1040_v10 = vmul.f32 %v3046_v11, %v2910_v40 }
 0x14f   :  { %v2584_v0 = vpop.eup %2583  ;;  %2603 = vrcp.f32 %v1359_v58  ;;  %v1357_v44 = vadd.f32 1.0, %v2582_v23  ;;  %v3152_v62 = vpop.f32.mrb[26].mxu1  ;;  %v3168_v58 = vadd.f32 %v2915_v42, %v1003_v63  ;;  %v1006_v26 = vmul.f32 %v2910_v40, %v3051_v17 }
 0x150   :  { %v2586_v57 = vpop.eup %2585  ;;  %2605 = vrcp.f32 %v1325_v34  ;;  %v1328_v39 = vadd.f32 1.0, %v2584_v0  ;;  %v3159_v25 = vpop.f32.mrb[27].mxu0  ;;  %v3171_v0 = vadd.f32 %v2915_v42, %v1035_v12  ;;  %v1038_v5 = vmul.f32 %v2910_v40, %v3053_v18 }
 0x151   :  { %3455 = vst [vmem:[#allocation12_spill] sm:$0xff] %v3159_v25  ;;  %v3161_v19 = vpop.f32.mrb[27].mxu1  ;;  %v2588_v32 = vpop.eup %2587  ;;  %2607 = vrcp.f32 %v1357_v44  ;;  %v1360_v9 = vadd.f32 1.0, %v2586_v57  ;;  %v3180_v57 = vadd.f32 %v2915_v42, %v1008_v30  ;;  %v1009_v12 = vmul.f32 %v3060_v27, %v2910_v40 }
 0x152   :  { %3456 = vst [vmem:[#allocation13_spill] sm:$0xff] %v3161_v19  ;;  %v2590_v23 = vpop.eup %2589  ;;  %2609 = vrcp.f32 %v1328_v39  ;;  %v1326_v34 = vadd.f32 1.0, %v2588_v32  ;;  %v1966_v32 = vmul.f32 -1.442695, %v3168_v58  ;;  %v1041_v17 = vmul.f32 %v3062_v61, %v2910_v40  ;;  %v3189_v18 = vpop.f32.mrb[28].mxu1 }
 0x153   :  { %v2592_v19 = vpop.eup %2591  ;;  %2611 = vrcp.f32 %v1360_v9  ;;  %v1358_v25 = vadd.f32 1.0, %v2590_v23  ;;  %v3187_v9 = vpop.f32.mrb[28].mxu0  ;;  %3457 = vst [vmem:[#allocation14_spill] sm:$0xff] %v3189_v18  ;;  %v3193_v30 = vadd.f32 %v2915_v42, %v1040_v10  ;;  %v1007_v27 = vmul.f32 %v2910_v40, %v3067_v43 }
 0x154   :  { %v2594_v63 = vpop.eup %2593  ;;  %2613 = vrcp.f32 %v1326_v34  ;;  %v1331_v44 = vadd.f32 1.0, %v2592_v19  ;;  %v3199_v34 = vpop.f32.mrb[29].mxu1  ;;  %v3203_v18 = vadd.f32 %v2915_v42, %v1006_v26 }
 0x155   :  { %v2596_v39 = vpop.eup %2595  ;;  %2615 = vrcp.f32 %v1358_v25  ;;  %v1363_v11 = vadd.f32 1.0, %v2594_v63  ;;  %v3197_v25 = vpop.f32.mrb[29].mxu0 }
 0x156   :  { %v2598_v23 = vpop.eup %2597  ;;  %v1548_v19 = vmul.f32 %v2596_v39, %v2985_v38  ;;  %2617 = vrcp.f32 %v1331_v44  ;;  %3458 = vst [vmem:[#allocation15_spill] sm:$0xff] %v3197_v25  ;;  %v3206_v38 = vadd.f32 %v2915_v42, %v1038_v5  ;;  %v3208_v44 = vpop.f32.mrb[30].mxu0 }
 0x157   :  { %v2600_v63 = vpop.eup %2599  ;;  %v1514_v61 = vmul.f32 %v2598_v23, %v2989_v55  ;;  %2619 = vrcp.f32 %v1363_v11  ;;  %3460 = vst [vmem:[#allocation17_spill] sm:$0xff] %v3208_v44  ;;  %v3210_v10 = vpop.f32.mrb[30].mxu1  ;;  %v3216_v55 = vadd.f32 %v2915_v42, %v1009_v12  ;;  %v1971_v12 = vmul.f32 -1.442695, %v3180_v57 }
 0x158   :  { %3459 = vst [vmem:[#allocation16_spill] sm:$0xff] %v3206_v38  ;;  %3461 = vst [vmem:[#allocation18_spill] sm:$0xff] %v3210_v10  ;;  %v2602_v39 = vpop.eup %2601  ;;  %v2243_v43 = vpack.c.bf16 %v1548_v19, %v3136_v16  ;;  %v1546_v25 = vmul.f32 %v2600_v63, %v2995_v2  ;;  %2621 = vpow2.f32 %v3121_v1  ;;  %v3218_v11 = vpop.f32.mrb[31].mxu0  ;;  %v1998_v10 = vmul.f32 -1.442695, %v3171_v0 }
 0x159   :  { %3462 = vst [vmem:[#allocation19_spill] sm:$0xff] %v3218_v11  ;;  %v3220_v26 = vpop.f32.mrb[31].mxu1  ;;  %v2604_v5 = vpop.eup %2603  ;;  %v2158_v23 = vpack.c.bf16 %v1514_v61, %v3145_v37  ;;  %2623 = vpow2.f32 %v3127_v4  ;;  %v3226_v16 = vadd.f32 %v2915_v42, %v1041_v17  ;;  %v3232_v19 = vadd.f32 %v2915_v42, %v1007_v27 }
 0x15a   :  { %3463 = vst [vmem:[#allocation20_spill] sm:$0xff] %v3220_v26  ;;  %v2606_v2 = vpop.eup %2605  ;;  %2323 = vst [vmem:[#allocation8 + $0x98] sm:$0xff] %v2243_v43   ;;  %v2238_v1 = vpack.c.bf16 %v1546_v25, %v3165_v60  ;;  %2625 = vpow2.f32 %v3148_v22  ;;  %v2003_v4 = vmul.f32 -1.442695, %v3193_v30  ;;  %v1969_v17 = vmul.f32 -1.442695, %v3203_v18 }
 0x15b   :  { %v2608_v63 = vpop.eup %2607  ;;  %2306 = vst [vmem:[#allocation8 + $0x10] sm:$0xff] %v2158_v23   ;;  %2627 = vpow2.f32 %v3155_v20  ;;  %v2001_v60 = vmul.f32 -1.442695, %v3206_v38  ;;  %v1972_v22 = vmul.f32 -1.442695, %v3216_v55  ;;  %v1519_v61 = vmul.f32 %v2602_v39, %v3007_v28 }
 0x15c   :  { %v2610_v37 = vpop.eup %2609  ;;  %2322 = vst [vmem:[#allocation8 + $0x90] sm:$0xff] %v2238_v1   ;;  %2629 = vpow2.f32 %v1966_v32  ;;  %v2004_v43 = vmul.f32 -1.442695, %v3226_v16  ;;  %v1551_v23 = vmul.f32 %v2604_v5, %v3015_v35  ;;  %v1970_v32 = vmul.f32 -1.442695, %v3232_v19 }
 0x15d   :  { %v2612_v25 = vpop.eup %2611  ;;  %v1520_v27 = vmul.f32 %v2610_v37, %v3029_v48  ;;  %2631 = vpow2.f32 %v1998_v10  ;;  %v1517_v38 = vmul.f32 %v2606_v2, %v3018_v36  ;;  %v1549_v48 = vmul.f32 %v2608_v63, %v3026_v45 }
 0x15e   :  { %v2614_v20 = vpop.eup %2613  ;;  %v1552_v1 = vmul.f32 %v2612_v25, %v3032_v49  ;;  %2633 = vpow2.f32 %v1971_v12  ;;  %v1039_v36 = vmul.f32 %v2910_v40, %v3069_v52 }
 0x15f   :  { %v2616_v26 = vpop.eup %2615  ;;  %v2173_v11 = vpack.c.bf16 %v1520_v27, %v1519_v61  ;;  %v1518_v44 = vmul.f32 %v2614_v20, %v3035_v54  ;;  %2635 = vpow2.f32 %v2003_v4  ;;  %v1012_v54 = vmul.f32 %v3086_v59, %v2910_v40 }
 0x160   :  { %v3247_v28 = vpop.eup %2617  ;;  %v2253_v10 = vpack.c.bf16 %v1552_v1, %v1551_v23  ;;  %v1550_v39 = vmul.f32 %v2616_v26, %v3058_v24  ;;  %2637 = vpow2.f32 %v1969_v17  ;;  %v1044_v24 = vmul.f32 %v3088_v6, %v2910_v40 }
 0x161   :  { %v3251_v35 = vpop.eup %2619  ;;  %2309 = vst [vmem:[#allocation8 + $0x28] sm:$0xff] %v2173_v11   ;;  %v2168_v49 = vpack.c.bf16 %v1518_v44, %v1517_v38  ;;  %2639 = vpow2.f32 %v2001_v60  ;;  %v1010_v38 = vmul.f32 %v2910_v40, %v3093_v7  ;;  %v3262_v26 = vadd.f32 %v2915_v42, %v1039_v36 }
 0x162   :  { %v2622_v5 = vpop.eup %2621  ;;  %2325 = vst [vmem:[#allocation8 + $0xa8] sm:$0xff] %v2253_v10   ;;  %v2248_v2 = vpack.c.bf16 %v1550_v39, %v1549_v48  ;;  %2641 = vpow2.f32 %v1972_v22  ;;  %v3265_v63 = vadd.f32 %v2915_v42, %v1012_v54  ;;  %v1042_v6 = vmul.f32 %v2910_v40, %v3095_v56 }
 0x163   :  { %v2624_v45 = vpop.eup %2623  ;;  %2308 = vst [vmem:[#allocation8 + $0x20] sm:$0xff] %v2168_v49   ;;  %v1329_v12 = vadd.f32 1.0, %v2622_v5  ;;  %2643 = vpow2.f32 %v2004_v43  ;;  %v3270_v60 = vadd.f32 %v2915_v42, %v1044_v24  ;;  %v3273_v22 = vadd.f32 %v2915_v42, %v1010_v38 }
 0x164   :  { %v2626_v44 = vpop.eup %2625  ;;  %2324 = vst [vmem:[#allocation8 + $0xa0] sm:$0xff] %v2248_v2   ;;  %v1361_v52 = vadd.f32 1.0, %v2624_v45  ;;  %2645 = vpow2.f32 %v1970_v32  ;;  %v1013_v27 = vmul.f32 %v3102_v29, %v2910_v40  ;;  %v1045_v43 = vmul.f32 %v3104_v33, %v2910_v40 }
 0x165   :  { %v2628_v11 = vpop.eup %2627  ;;  %2647 = vrcp.f32 %v1329_v12  ;;  %v1332_v59 = vadd.f32 1.0, %v2626_v44  ;;  %v2002_v23 = vmul.f32 -1.442695, %v3262_v26  ;;  %v1975_v1 = vmul.f32 -1.442695, %v3265_v63 }
 0x166   :  { %v2630_v4 = vpop.eup %2629  ;;  %2649 = vrcp.f32 %v1361_v52  ;;  %v1364_v37 = vadd.f32 1.0, %v2628_v11  ;;  %v3282_v10 = vadd.f32 %v2915_v42, %v1042_v6  ;;  %v1011_v39 = vmul.f32 %v2910_v40, %v3110_v15 }
 0x167   :  { %v2632_v7 = vpop.eup %2631  ;;  %2651 = vrcp.f32 %v1332_v59  ;;  %v1330_v17 = vadd.f32 1.0, %v2630_v4  ;;  %v2007_v33 = vmul.f32 -1.442695, %v3270_v60  ;;  %v1973_v36 = vmul.f32 -1.442695, %v3273_v22 }
 0x168   :  { %v2634_v25 = vpop.eup %2633  ;;  %2653 = vrcp.f32 %v1364_v37  ;;  %v1362_v61 = vadd.f32 1.0, %v2632_v7  ;;  %v3289_v2 = vadd.f32 %v2915_v42, %v1013_v27  ;;  %v3292_v45 = vadd.f32 %v2915_v42, %v1045_v43 }
 0x169   :  { %v2636_v20 = vpop.eup %2635  ;;  %2655 = vrcp.f32 %v1330_v17  ;;  %v1335_v56 = vadd.f32 1.0, %v2634_v25  ;;  %v1043_v15 = vmul.f32 %v2910_v40, %v3112_v41  ;;  %v1016_v38 = vmul.f32 %v3131_v3, %v2910_v40 }
 0x16a   :  { %v2638_v32 = vpop.eup %2637  ;;  %2657 = vrcp.f32 %v1362_v61  ;;  %v1367_v48 = vadd.f32 1.0, %v2636_v20  ;;  %v2005_v11 = vmul.f32 -1.442695, %v3282_v10  ;;  %v3300_v59 = vadd.f32 %v2915_v42, %v1011_v39 }
 0x16b   :  { %v2640_v29 = vpop.eup %2639  ;;  %2659 = vrcp.f32 %v1335_v56  ;;  %v1333_v49 = vadd.f32 1.0, %v2638_v32  ;;  %v1048_v6 = vmul.f32 %v3133_v13, %v2910_v40  ;;  %v1014_v41 = vmul.f32 %v2910_v40, %v3140_v46 }
 0x16c   :  { %v2642_v54 = vpop.eup %2641  ;;  %2661 = vrcp.f32 %v1367_v48  ;;  %v1365_v5 = vadd.f32 1.0, %v2640_v29  ;;  %v1523_v3 = vmul.f32 %v3247_v28, %v3073_v47  ;;  %v1976_v17 = vmul.f32 -1.442695, %v3289_v2 }
 0x16d   :  { %v2644_v12 = vpop.eup %2643  ;;  %2663 = vrcp.f32 %v1333_v49  ;;  %v1336_v24 = vadd.f32 1.0, %v2642_v54  ;;  %v2008_v25 = vmul.f32 -1.442695, %v3292_v45  ;;  %v1555_v27 = vmul.f32 %v3251_v35, %v3076_v50 }
 0x16e   :  { %v2646_v44 = vpop.eup %2645  ;;  %2665 = vrcp.f32 %v1365_v5  ;;  %v1368_v52 = vadd.f32 1.0, %v2644_v12  ;;  %v3313_v43 = vadd.f32 %v2915_v42, %v1043_v15  ;;  %v3316_v13 = vadd.f32 %v2915_v42, %v1016_v38 }
 0x16f   :  { %v2648_v4 = vpop.eup %2647  ;;  %2667 = vrcp.f32 %v1336_v24  ;;  %v1334_v37 = vadd.f32 1.0, %v2646_v44  ;;  %v1974_v47 = vmul.f32 -1.442695, %v3300_v59  ;;  %v1046_v28 = vmul.f32 %v2910_v40, %v3142_v53 }
 0x170   :  { %v2650_v7 = vpop.eup %2649  ;;  %2669 = vrcp.f32 %v1368_v52  ;;  %v3324_v50 = vadd.f32 %v2915_v42, %v1048_v6  ;;  %v3327_v35 = vadd.f32 %v2915_v42, %v1014_v41  ;;  %v1521_v39 = vmul.f32 %v2648_v4, %v3098_v14 }
 0x171   :  { %v2652_v61 = vpop.eup %2651  ;;  %2671 = vrcp.f32 %v1334_v37  ;;  %v1553_v53 = vmul.f32 %v2650_v7, %v3115_v31  ;;  %v2006_v5 = vmul.f32 -1.442695, %v3313_v43  ;;  %v3335_v12 = vadd.f32 %v2915_v42, %v1046_v28 }
 0x172   :  { %v2654_v46 = vpop.eup %2653  ;;  %v1524_v20 = vmul.f32 %v2652_v61, %v3118_v51  ;;  %2673 = vpow2.f32 %v2002_v23  ;;  %v1977_v24 = vmul.f32 -1.442695, %v3327_v35  ;;  %v1017_v15 = vmul.f32 %v3150_v21, %v2910_v40 }
 0x173   :  { %v2656_v56 = vpop.eup %2655  ;;  %v1556_v32 = vmul.f32 %v2654_v46, %v3124_v8  ;;  %2675 = vpow2.f32 %v1975_v1  ;;  %v1049_v38 = vmul.f32 %v3152_v62, %v2910_v40  ;;  %v2009_v4 = vmul.f32 -1.442695, %v3335_v12 }
 0x174   :  { %v2658_v48 = vpop.eup %2657  ;;  %v2183_v51 = vpack.c.bf16 %v1524_v20, %v1523_v3  ;;  %v1522_v23 = vmul.f32 %v2656_v56, %v3168_v58  ;;  %2677 = vpow2.f32 %v2007_v33  ;;  %v1979_v33 = vmul.f32 -1.442695, %v3316_v13  ;;  %v2773_v20 = vld [vmem:[%s3451_s2] ss:$0 sm:$0xff] }
 0x175   :  { %v2660_v29 = vpop.eup %2659  ;;  %v2263_v49 = vpack.c.bf16 %v1556_v32, %v1555_v27  ;;  %v1554_v8 = vmul.f32 %v2658_v48, %v3171_v0  ;;  %2679 = vpow2.f32 %v1973_v36  ;;  %v2011_v0 = vmul.f32 -1.442695, %v3324_v50 }
 0x176   :  { %v2662_v1 = vpop.eup %2661  ;;  %2311 = vst [vmem:[#allocation8 + $0x38] sm:$0xff] %v2183_v51   ;;  %v2178_v54 = vpack.c.bf16 %v1522_v23, %v1521_v39  ;;  %2681 = vpow2.f32 %v2005_v11  ;;  %v1527_v52 = vmul.f32 %v2660_v29, %v3180_v57 }
 0x177   :  { %v2664_v14 = vpop.eup %2663  ;;  %2327 = vst [vmem:[#allocation8 + $0xb8] sm:$0xff] %v2263_v49   ;;  %v2258_v58 = vpack.c.bf16 %v1554_v8, %v1553_v53  ;;  %2683 = vpow2.f32 %v1976_v17  ;;  %v1559_v6 = vmul.f32 %v2662_v1, %v3193_v30  ;;  %v3465_v53 = vld [vmem:[#allocation13_spill] sm:$0xff]  ;;  %v1020_v8 = vmul.f32 %v2773_v20, %v3187_v9 }
 0x178   :  { %v3338_v31 = vpop.eup %2665  ;;  %2310 = vst [vmem:[#allocation8 + $0x30] sm:$0xff] %v2178_v54   ;;  %2685 = vpow2.f32 %v2008_v25  ;;  %v1525_v21 = vmul.f32 %v2664_v14, %v3203_v18  ;;  %v1047_v49 = vmul.f32 %v2773_v20, %v3465_v53 }
 0x179   :  { %v2668_v36 = vpop.eup %2667  ;;  %2326 = vst [vmem:[#allocation8 + $0xb0] sm:$0xff] %v2258_v58   ;;  %2687 = vpow2.f32 %v1974_v47  ;;  %v3464_v47 = vld [vmem:[#allocation12_spill] sm:$0xff]  ;;  %v3466_v58 = vld [vmem:[#allocation14_spill] sm:$0xff] }
 0x17a   :  { %v2670_v44 = vpop.eup %2669  ;;  %v1528_v11 = vmul.f32 %v2668_v36, %v3216_v55  ;;  %2689 = vpow2.f32 %v2006_v5  ;;  %v3354_v55 = vadd.f32 %v2915_v42, %v1017_v15  ;;  %v1015_v28 = vmul.f32 %v2773_v20, %v3464_v47  ;;  %v2774_v5 = vld [vmem:[%s3452_s3] ss:$0 sm:$0xff]  ;;  %s2851_s3 = smov [#allocation8]  }
 0x17b   :  { %v2672_v37 = vpop.eup %2671  ;;  %v1560_v41 = vmul.f32 %v2670_v44, %v3226_v16  ;;  %2691 = vpow2.f32 %v1979_v33  ;;  %v3357_v16 = vadd.f32 %v2915_v42, %v1049_v38  ;;  %v1052_v33 = vmul.f32 %v2773_v20, %v3466_v58  ;;  %s1898_s20 = sshll.u32 %s2851_s3, 4  ;;  %s1899_s20 = int_to_ptr.vmem [resolvable:$true] %s1898_s20 }
 0x17c   :  { %v2674_v7 = vpop.eup %2673  ;;  %v2193_v3 = vpack.c.bf16 %v1528_v11, %v1527_v52  ;;  %v1526_v40 = vmul.f32 %v2672_v37, %v3232_v19  ;;  %2693 = vpow2.f32 %v2011_v0  ;;  %v1980_v39 = vmul.f32 -1.442695, %v3354_v55  ;;  %v3468_v52 = vld [vmem:[#allocation17_spill] sm:$0xff]  ;;  %s2819_s21 = scalar_lea.vmem %s1899_s20, 4096  ;;  %p2824_p3 = scmp.lt.s32.totalorder %s1899_s20, %s1899_s20 }
 0x17d   :  { %v2676_v62 = vpop.eup %2675  ;;  %v2273_v57 = vpack.c.bf16 %v1560_v41, %v1559_v6  ;;  %v1366_v17 = vadd.f32 1.0, %v2674_v7  ;;  %2695 = vpow2.f32 %v1977_v24  ;;  %v2012_v51 = vmul.f32 -1.442695, %v3357_v16  ;;  %v3467_v24 = vld [vmem:[#allocation15_spill] sm:$0xff]  ;;  %p2820_p2 = scmp.ne.s32.totalorder %s1899_s20, %s2819_s21  ;;  %p2825_p4 = scmp.lt.s32.totalorder %s2819_s21, %s2819_s21 }
 0x17e   :  { %v2678_v25 = vpop.eup %2677  ;;  %2313 = vst [vmem:[#allocation8 + $0x48] sm:$0xff] %v2193_v3   ;;  %v2188_v30 = vpack.c.bf16 %v1526_v40, %v1525_v21  ;;  %v1339_v61 = vadd.f32 1.0, %v2676_v62  ;;  %2697 = vpow2.f32 %v2009_v4  ;;  %v3370_v14 = vadd.f32 %v2774_v5, %v1015_v28  ;;  %v3469_v4 = vld [vmem:[#allocation18_spill] sm:$0xff] }
 0x17f   :  { %v2680_v18 = vpop.eup %2679  ;;  %2329 = vst [vmem:[#allocation8 + $0xc8] sm:$0xff] %v2273_v57   ;;  %2699 = vrcp.f32 %v1366_v17  ;;  %v1371_v19 = vadd.f32 1.0, %v2678_v25  ;;  %v1018_v15 = vmul.f32 %v2773_v20, %v3467_v24  ;;  %v1050_v38 = vmul.f32 %v2773_v20, %v3199_v34  ;;  %v3470_v34 = vld [vmem:[#allocation19_spill] sm:$0xff]  ;;  %p2826_p5 = por %p2825_p4, %p2824_p3 }
 0x180   :  { %v2682_v27 = vpop.eup %2681  ;;  %2312 = vst [vmem:[#allocation8 + $0x40] sm:$0xff] %v2188_v30   ;;  %2701 = vrcp.f32 %v1339_v61  ;;  %v1337_v46 = vadd.f32 1.0, %v2680_v18  ;;  %v1021_v11 = vmul.f32 %v2773_v20, %v3468_v52  ;;  %v1053_v37 = vmul.f32 %v2773_v20, %v3469_v4  ;;  %v3471_v30 = vld [vmem:[#allocation16_spill] sm:$0xff] }
 0x181   :  { %v2684_v56 = vpop.eup %2683  ;;  %2703 = vrcp.f32 %v1371_v19  ;;  %v1369_v32 = vadd.f32 1.0, %v2682_v27  ;;  %v3377_v7 = vadd.f32 %v2774_v5, %v1047_v49  ;;  %v3379_v21 = vadd.f32 %v2774_v5, %v1020_v8  ;;  %p2827_p6 = pnand %p2826_p5, %p2820_p2 }
 0x182   :  { %v2686_v48 = vpop.eup %2685  ;;  %2705 = vrcp.f32 %v1337_v46  ;;  %v1340_v42 = vadd.f32 1.0, %v2684_v56  ;;  %v1978_v62 = vmul.f32 -1.442695, %v3370_v14  ;;  %v3382_v57 = vadd.f32 %v2774_v5, %v1052_v33 }
 0x183   :  { %v2688_v23 = vpop.eup %2687  ;;  %2707 = vrcp.f32 %v1369_v32  ;;  %v1372_v29 = vadd.f32 1.0, %v2686_v48  ;;  %v1019_v17 = vmul.f32 %v2773_v20, %v3470_v34  ;;  %v1557_v61 = vmul.f32 %v3338_v31, %v3471_v30  ;;  %v3472_v48 = vld [vmem:[#allocation20_spill] sm:$0xff] }
 0x184   :  { %v2690_v1 = vpop.eup %2689  ;;  %2709 = vrcp.f32 %v1340_v42  ;;  %v1338_v54 = vadd.f32 1.0, %v2688_v23  ;;  %v3387_v18 = vadd.f32 %v2774_v5, %v1018_v15  ;;  %v3389_v19 = vadd.f32 %v2774_v5, %v1050_v38 }
 0x185   :  { %v2692_v0 = vpop.eup %2691  ;;  %2711 = vrcp.f32 %v1372_v29  ;;  %v1370_v36 = vadd.f32 1.0, %v2690_v1  ;;  %v3392_v47 = vadd.f32 %v2774_v5, %v1021_v11  ;;  %v3394_v28 = vadd.f32 %v2774_v5, %v1053_v37 }
 0x186   :  { %v2694_v44 = vpop.eup %2693  ;;  %2713 = vrcp.f32 %v1338_v54  ;;  %v1343_v9 = vadd.f32 1.0, %v2692_v0  ;;  %v2010_v32 = vmul.f32 -1.442695, %v3377_v7  ;;  %v1051_v42 = vmul.f32 %v2773_v20, %v3472_v48 }
 0x187   :  { %v2696_v6 = vpop.eup %2695  ;;  %2715 = vrcp.f32 %v1370_v36  ;;  %v1375_v41 = vadd.f32 1.0, %v2694_v44  ;;  %v1983_v29 = vmul.f32 -1.442695, %v3379_v21  ;;  %v3399_v53 = vadd.f32 %v2774_v5, %v1019_v17 }
 0x188   :  { %v2698_v3 = vpop.eup %2697  ;;  %v1341_v40 = vadd.f32 1.0, %v2696_v6  ;;  %2717 = vrcp.f32 %v1343_v9  ;;  %v1981_v8 = vmul.f32 -1.442695, %v3387_v18  ;;  %v2013_v54 = vmul.f32 -1.442695, %v3389_v19 }
 0x189   :  { %v2700_v25 = vpop.eup %2699  ;;  %2719 = vrcp.f32 %v1375_v41  ;;  %v1984_v20 = vmul.f32 -1.442695, %v3392_v47  ;;  %v2016_v58 = vmul.f32 -1.442695, %v3394_v28  ;;  %v1982_v38 = vmul.f32 -1.442695, %v3399_v53 }
 0x18a   :  { %v2702_v27 = vpop.eup %2701  ;;  %v1558_v46 = vmul.f32 %v2700_v25, %v3262_v26  ;;  %2721 = vrcp.f32 %v1341_v40  ;;  %v2015_v26 = vmul.f32 -1.442695, %v3382_v57 }
 0x18b   :  { %v2704_v56 = vpop.eup %2703  ;;  %2723 = vpow2.f32 %v1980_v39  ;;  %v1531_v33 = vmul.f32 %v2702_v27, %v3265_v63 }
 0x18c   :  { %v2706_v31 = vpop.eup %2705  ;;  %v2268_v23 = vpack.c.bf16 %v1558_v46, %v1557_v61  ;;  %2725 = vpow2.f32 %v2012_v51  ;;  %v3408_v51 = vadd.f32 %v2774_v5, %v1051_v42  ;;  %v1563_v24 = vmul.f32 %v2704_v56, %v3270_v60 }
 0x18d   :  { %v2708_v49 = vpop.eup %2707  ;;  %2727 = vpow2.f32 %v1978_v62  ;;  %v1529_v9 = vmul.f32 %v2706_v31, %v3273_v22  ;;  %v1373_v22 = vadd.f32 1.0, %v2698_v3 }
 0x18e   :  { %v2710_v1 = vpop.eup %2709  ;;  %2328 = vst [vmem:[#allocation8 + $0xc0] sm:$0xff] %v2268_v23   ;;  %2729 = vpow2.f32 %v2010_v32  ;;  %v1561_v63 = vmul.f32 %v2708_v49, %v3282_v10 }
 0x18f   :  { %v2712_v39 = vpop.eup %2711  ;;  %v1532_v0 = vmul.f32 %v2710_v1, %v3289_v2  ;;  %2731 = vpow2.f32 %v1983_v29 }
 0x190   :  { %v2714_v36 = vpop.eup %2713  ;;  %v1564_v15 = vmul.f32 %v2712_v39, %v3292_v45  ;;  %2733 = vpow2.f32 %v2015_v26  ;;  %v2014_v45 = vmul.f32 -1.442695, %v3408_v51 }
 0x191   :  { %v2716_v44 = vpop.eup %2715  ;;  %v2203_v52 = vpack.c.bf16 %v1532_v0, %v1531_v33  ;;  %v1530_v11 = vmul.f32 %v2714_v36, %v3300_v59  ;;  %2735 = vpow2.f32 %v1981_v8 }
 0x192   :  { %v2283_v2 = vpack.c.bf16 %v1564_v15, %v1563_v24  ;;  %v1562_v5 = vmul.f32 %v2716_v44, %v3313_v43  ;;  %v2718_v4 = vpop.eup %2717  ;;  %2737 = vpow2.f32 %v2013_v54 }
 0x193   :  { %2315 = vst [vmem:[#allocation8 + $0x58] sm:$0xff] %v2203_v52   ;;  %v2198_v60 = vpack.c.bf16 %v1530_v11, %v1529_v9  ;;  %v2720_v37 = vpop.eup %2719  ;;  %2739 = vpow2.f32 %v1984_v20  ;;  %v1535_v39 = vmul.f32 %v2718_v4, %v3316_v13 }
 0x194   :  { %2331 = vst [vmem:[#allocation8 + $0xd8] sm:$0xff] %v2283_v2   ;;  %v2278_v6 = vpack.c.bf16 %v1562_v5, %v1561_v63  ;;  %v2722_v41 = vpop.eup %2721  ;;  %2741 = vpow2.f32 %v2016_v58  ;;  %v1567_v36 = vmul.f32 %v2720_v37, %v3324_v50 }
 0x195   :  { %2314 = vst [vmem:[#allocation8 + $0x50] sm:$0xff] %v2198_v60   ;;  %v2724_v59 = vpop.eup %2723  ;;  %2743 = vpow2.f32 %v1982_v38  ;;  %v1533_v38 = vmul.f32 %v2722_v41, %v3327_v35 }
 0x196   :  { %2330 = vst [vmem:[#allocation8 + $0xd0] sm:$0xff] %v2278_v6   ;;  %v2726_v10 = vpop.eup %2725  ;;  %v1344_v43 = vadd.f32 1.0, %v2724_v59  ;;  %2745 = vpow2.f32 %v2014_v45 }
 0x197   :  { %v2728_v40 = vpop.eup %2727  ;;  %2747 = vrcp.f32 %v1373_v22  ;;  %v1376_v62 = vadd.f32 1.0, %v2726_v10 }
 0x198   :  { %v2730_v34 = vpop.eup %2729  ;;  %2749 = vrcp.f32 %v1344_v43  ;;  %v1342_v17 = vadd.f32 1.0, %v2728_v40 }
 0x199   :  { %v2732_v25 = vpop.eup %2731  ;;  %2751 = vrcp.f32 %v1376_v62  ;;  %v1374_v30 = vadd.f32 1.0, %v2730_v34 }
 0x19a   :  { %v2734_v3 = vpop.eup %2733  ;;  %2753 = vrcp.f32 %v1342_v17  ;;  %v1347_v61 = vadd.f32 1.0, %v2732_v25 }
 0x19b   :  { %v2736_v27 = vpop.eup %2735  ;;  %2755 = vrcp.f32 %v1374_v30  ;;  %v1379_v46 = vadd.f32 1.0, %v2734_v3 }
 0x19c   :  { %v2738_v56 = vpop.eup %2737  ;;  %2757 = vrcp.f32 %v1347_v61  ;;  %v1345_v32 = vadd.f32 1.0, %v2736_v27 }
 0x19d   :  { %v2740_v48 = vpop.eup %2739  ;;  %2759 = vrcp.f32 %v1379_v46  ;;  %v1377_v42 = vadd.f32 1.0, %v2738_v56 }
 0x19e   :  { %v2742_v31 = vpop.eup %2741  ;;  %2761 = vrcp.f32 %v1345_v32  ;;  %v1348_v23 = vadd.f32 1.0, %v2740_v48 }
 0x19f   :  { %v2744_v29 = vpop.eup %2743  ;;  %2763 = vrcp.f32 %v1377_v42  ;;  %v1380_v49 = vadd.f32 1.0, %v2742_v31 }
 0x1a0   :  { %v2746_v26 = vpop.eup %2745  ;;  %2765 = vrcp.f32 %v1348_v23  ;;  %v1346_v8 = vadd.f32 1.0, %v2744_v29 }
 0x1a1   :  { %v2748_v1 = vpop.eup %2747  ;;  %2767 = vrcp.f32 %v1380_v49  ;;  %v1378_v54 = vadd.f32 1.0, %v2746_v26 }
 0x1a2   :  { %v2750_v20 = vpop.eup %2749  ;;  %2769 = vrcp.f32 %v1346_v8  ;;  %v1565_v11 = vmul.f32 %v2748_v1, %v3335_v12 }
 0x1a3   :  { %v2752_v58 = vpop.eup %2751  ;;  %v1536_v33 = vmul.f32 %v2750_v20, %v3354_v55  ;;  %2771 = vrcp.f32 %v1378_v54 }
 0x1a4   :  { %v2754_v0 = vpop.eup %2753  ;;  %v1568_v24 = vmul.f32 %v2752_v58, %v3357_v16 }
 0x1a5   :  { %v2756_v15 = vpop.eup %2755  ;;  %v2213_v44 = vpack.c.bf16 %v1536_v33, %v1535_v39  ;;  %v1534_v9 = vmul.f32 %v2754_v0, %v3370_v14 }
 0x1a6   :  { %v2758_v52 = vpop.eup %2757  ;;  %v2293_v63 = vpack.c.bf16 %v1568_v24, %v1567_v36  ;;  %v1566_v13 = vmul.f32 %v2756_v15, %v3377_v7 }
 0x1a7   :  { %v2760_v2 = vpop.eup %2759  ;;  %2317 = vst [vmem:[#allocation8 + $0x68] sm:$0xff] %v2213_v44   ;;  %v2208_v55 = vpack.c.bf16 %v1534_v9, %v1533_v38  ;;  %v1539_v60 = vmul.f32 %v2758_v52, %v3379_v21 }
 0x1a8   :  { %v2762_v5 = vpop.eup %2761  ;;  %2333 = vst [vmem:[#allocation8 + $0xe8] sm:$0xff] %v2293_v63   ;;  %v2288_v50 = vpack.c.bf16 %v1566_v13, %v1565_v11  ;;  %v1571_v12 = vmul.f32 %v2760_v2, %v3382_v57 }
 0x1a9   :  { %v2764_v4 = vpop.eup %2763  ;;  %2316 = vst [vmem:[#allocation8 + $0x60] sm:$0xff] %v2208_v55   ;;  %v1537_v6 = vmul.f32 %v2762_v5, %v3387_v18 }
 0x1aa   :  { %v2766_v16 = vpop.eup %2765  ;;  %2332 = vst [vmem:[#allocation8 + $0xe0] sm:$0xff] %v2288_v50   ;;  %v1569_v59 = vmul.f32 %v2764_v4, %v3389_v19 }
 0x1ab   :  { %v2768_v35 = vpop.eup %2767  ;;  %v1540_v14 = vmul.f32 %v2766_v16, %v3392_v47 }
 0x1ac   :  { %v2770_v45 = vpop.eup %2769  ;;  %v1572_v7 = vmul.f32 %v2768_v35, %v3394_v28 }
 0x1ad   :  { %v2772_v37 = vpop.eup %2771  ;;  %v2223_v22 = vpack.c.bf16 %v1540_v14, %v1539_v60  ;;  %v1538_v41 = vmul.f32 %v2770_v45, %v3399_v53 }
 0x1ae   :  { %v2303_v10 = vpack.c.bf16 %v1572_v7, %v1571_v12  ;;  %v1570_v21 = vmul.f32 %v2772_v37, %v3408_v51 }
 0x1af   :  { %2319 = vst [vmem:[#allocation8 + $0x78] sm:$0xff] %v2223_v22   ;;  %v2218_v47 = vpack.c.bf16 %v1538_v41, %v1537_v6 }
 0x1b0   :  { %2335 = vst [vmem:[#allocation8 + $0xf8] sm:$0xff] %v2303_v10   ;;  %v2298_v43 = vpack.c.bf16 %v1570_v21, %v1569_v59 }
 0x1b1   :  { %2318 = vst [vmem:[#allocation8 + $0x70] sm:$0xff] %v2218_v47  }
 0x1b2   :  { %2334 = vst [vmem:[#allocation8 + $0xf0] sm:$0xff] %v2298_v43  }
 0x1b3   :  { %2830 = shalt.err (!%p2827_p6)
}
 0x1b4   :  { %s2831_s24 = scalar_lea.hbm %s3453_s4, 4096 }
 0x1b5   :  { %p2832_p7 = scmp.ne.s32.totalorder %s3453_s4, %s2831_s24  ;;  %p2835_p8 = scmp.lt.u32.totalorder %s2831_s24, %s3453_s4 }
 0x1b7   :  { %p2837_p9 = pnand %p2835_p8, %p2832_p7 }
 0x1b9   :  { %2840 = shalt.err (!%p2837_p9)
}
 0x1ba   :  { %1904 = dma.vmem_to_hbm [thread:$0]  %s1899_s20, 4096, %s3453_s4, [#allocation5], %s2848_s25, %s2848_s25, %s2849_s26  }
 0x1bb   :  { %2845 = dma.done.wait [#allocation5], 4096  }
 0x1bc   :  { %2846 = vsyncadd [#allocation5], 4294963200 }
 0x1bd   :  { %1908 = vsyncpa [#allocation4], 1 }
 0x1be   :  { %1909 = vsyncpa [#allocation7], 1 }
 0x1bf   :  { %1910 = vsyncpa [#allocation5], 1 }

</bundles_post_ra>
